<compile_context>
chip_gen: v7x
topology: tpu7x:2x2x1
jax: 0.10.0
libtpu: 0.0.40
codegen_flags: <defaults>
</compile_context>

<pallas_src>
import functools
import math

import jax
import jax.numpy as jnp
from jax import lax
from jax.experimental import pallas as pl
from jax.experimental.pallas import tpu as pltpu

N_HEAD = 8
DROP_P = 0.1
LN_EPS = 1e-5


def _layernorm(x, g, b):
    mu = jnp.mean(x, axis=-1, keepdims=True)
    var = jnp.mean((x - mu) ** 2, axis=-1, keepdims=True)
    return (x - mu) * lax.rsqrt(var + LN_EPS) * g + b


def transformer_body_kernel(x_ref, drop_ref,
                            wqkv_ref, bqkv_ref, wo_ref, bo_ref,
                            ln1g_ref, ln1b_ref,
                            w1_ref, b1_ref, w2_ref, b2_ref,
                            ln2g_ref, ln2b_ref,
                            out_ref, *, batch, seq, n_head):
    # --- dropout (p=0.1, train=True) via a pre-scaled keep mask (0 or 1/(1-p)) ---
    # TODO(synk): torch.dropout uses torch's RNG stream; a bit-for-bit match is
    # impossible — Bernoulli-keep + 1/(1-p) rescale semantics are preserved, and
    # the mask is generated host-side since pltpu.prng_* has no interpret-mode
    # lowering.
    x = x_ref[...] * drop_ref[...]                      # (B*S, E) float32
    bs, emb = x.shape
    dh = emb // n_head
    scale = 1.0 / math.sqrt(dh)

    # --- fused QKV projection: one (B*S, E) @ (E, 3E) MXU matmul (bf16 in, f32 out)
    xb = x.astype(jnp.bfloat16)
    qkv = jnp.dot(xb, wqkv_ref[...],
                  preferred_element_type=jnp.float32) + bqkv_ref[...]
    q = qkv[:, :emb].reshape(batch, seq, emb).astype(jnp.bfloat16)
    k = qkv[:, emb:2 * emb].reshape(batch, seq, emb).astype(jnp.bfloat16)
    v = qkv[:, 2 * emb:].reshape(batch, seq, emb).astype(jnp.bfloat16)

    # causal mask (torch.triu(ones(S,S), diagonal=1)): True => future, masked out
    row = lax.broadcasted_iota(jnp.int32, (seq, seq), 0)
    col = lax.broadcasted_iota(jnp.int32, (seq, seq), 1)
    causal = (col > row)[None, :, :]                    # (1, S, S)

    wo = wo_ref[...]                                    # (E, E) bf16
    attn = jnp.zeros((bs, emb), jnp.float32)
    for head in range(n_head):
        sl = slice(head * dh, (head + 1) * dh)
        qh, kh, vh = q[:, :, sl], k[:, :, sl], v[:, :, sl]
        # B-batched score / context contractions (flash-attention-style einsums)
        s = jnp.einsum('bqd,bkd->bqk', qh, kh,
                       preferred_element_type=jnp.float32) * scale
        s = jnp.where(causal, -1e30, s)
        s = s - jnp.max(s, axis=-1, keepdims=True)
        p = jnp.exp(s)                                  # f32 softmax
        p = p / jnp.sum(p, axis=-1, keepdims=True)
        ctx = jnp.einsum('bqk,bkd->bqd', p.astype(jnp.bfloat16), vh,
                         preferred_element_type=jnp.float32)      # (B, S, dh)
        # fold this head straight through its slice of the output projection
        # (removes the concatenate over heads entirely)
        attn = attn + jnp.dot(ctx.reshape(bs, dh).astype(jnp.bfloat16),
                              wo[sl, :],
                              preferred_element_type=jnp.float32)
    attn = attn + bo_ref[...]

    # residual + LayerNorm (f32)
    x1 = _layernorm(x + attn, ln1g_ref[...], ln1b_ref[...])

    # --- feed-forward (hidden_dim == emb_dim per the module constructor) ---
    h1 = jnp.maximum(
        jnp.dot(x1.astype(jnp.bfloat16), w1_ref[...],
                preferred_element_type=jnp.float32) + b1_ref[...], 0.0)
    ff = jnp.dot(h1.astype(jnp.bfloat16), w2_ref[...],
                 preferred_element_type=jnp.float32) + b2_ref[...]
    out_ref[...] = _layernorm(x1 + ff, ln2g_ref[...], ln2b_ref[...])


def tied_logits_kernel(h_ref, ewt_ref, o_ref):
    # logits tile = hidden @ emb_w.T[:, v*tv:(v+1)*tv]  (emb pre-transposed in HBM)
    o_ref[...] = jnp.dot(h_ref[...].astype(jnp.bfloat16), ewt_ref[...],
                         preferred_element_type=jnp.float32)


def _pick_vocab_tile(vocab):
    for tv in (4096, 2048, 1024, 512, 256, 128):
        if vocab % tv == 0:
            return tv
    return vocab  # fall back to the full vocab as a single block


def make_params(key, vocab, emb, hidden):
    ks = jax.random.split(key, 13)

    def init(k, shape, scale=0.02):
        return (scale * jax.random.normal(k, shape)).astype(jnp.float32)

    emb_w = init(ks[0], (vocab, emb))
    emb_w = emb_w.at[0].set(0.0)      # nn.Embedding(padding_idx=0)
    return dict(
        emb_w=emb_w,
        pos_emb=jnp.zeros((60, 1, emb), jnp.float32),   # torch.zeros init
        wq=init(ks[1], (emb, emb)), bq=init(ks[2], (1, emb)),
        wk=init(ks[3], (emb, emb)), bk=init(ks[4], (1, emb)),
        wv=init(ks[5], (emb, emb)), bv=init(ks[6], (1, emb)),
        wo=init(ks[7], (emb, emb)), bo=init(ks[8], (1, emb)),
        ln1g=jnp.ones((1, emb), jnp.float32), ln1b=jnp.zeros((1, emb), jnp.float32),
        w1=init(ks[9], (emb, hidden)), b1=init(ks[10], (1, hidden)),
        w2=init(ks[11], (hidden, emb)), b2=init(ks[12], (1, emb)),
        ln2g=jnp.ones((1, emb), jnp.float32), ln2b=jnp.zeros((1, emb), jnp.float32),
    )


def lm_transformer_forward(tokens, params, dropout_key, train=True):
    """tokens: (S, B) int32 -> logits (S, B, V) float32, matching PyTorch."""
    S, B = tokens.shape
    V, E = params["emb_w"].shape

    # --- glue: embedding gather + positional embedding + permute, in plain JAX ---
    embs = params["emb_w"][tokens]                  # (S, B, E)
    embs = embs + params["pos_emb"][:S]             # broadcast over batch
    x = jnp.transpose(embs, (1, 0, 2)).reshape(B * S, E).astype(jnp.float32)

    # --- dropout keep-mask, pre-scaled by 1/(1-p) ---
    if train:
        keep = jax.random.bernoulli(dropout_key, 1.0 - DROP_P, (B * S, E))
        drop_mask = keep.astype(jnp.float32) * (1.0 / (1.0 - DROP_P))
    else:
        drop_mask = jnp.ones((B * S, E), jnp.float32)

    # --- weight packing: fused QKV, bf16 MXU operands (vector math stays f32) ---
    wqkv = jnp.concatenate([params["wq"], params["wk"], params["wv"]],
                           axis=1).astype(jnp.bfloat16)           # (E, 3E)
    bqkv = jnp.concatenate([params["bq"], params["bk"], params["bv"]], axis=1)
    wo = params["wo"].astype(jnp.bfloat16)
    w1 = params["w1"].astype(jnp.bfloat16)
    w2 = params["w2"].astype(jnp.bfloat16)

    body = functools.partial(transformer_body_kernel,
                             batch=B, seq=S, n_head=N_HEAD)
    hidden = pl.pallas_call(
        body,
        out_shape=jax.ShapeDtypeStruct((B * S, E), jnp.float32),
    )(x, drop_mask, wqkv, bqkv, wo, params["bo"],
      params["ln1g"], params["ln1b"],
      w1, params["b1"], w2, params["b2"],
      params["ln2g"], params["ln2b"])

    # --- tied output projection: emb weight pre-transposed, streamed in V tiles ---
    emb_wT = params["emb_w"].T.astype(jnp.bfloat16)               # (E, V)
    tv = _pick_vocab_tile(V)
    logits = pl.pallas_call(
        tied_logits_kernel,
        out_shape=jax.ShapeDtypeStruct((B * S, V), jnp.float32),
        grid=(V // tv,),
        in_specs=[pl.BlockSpec((B * S, E), lambda v: (0, 0)),
                  pl.BlockSpec((E, tv), lambda v: (0, v))],
        out_specs=pl.BlockSpec((B * S, tv), lambda v: (0, v)),
        compiler_params=pltpu.CompilerParams(
            dimension_semantics=("parallel",)),
    )(hidden, emb_wT)

    return jnp.transpose(logits.reshape(B, S, V), (1, 0, 2))      # (S, B, V)


if __name__ == "__main__":
    vocab_size, emb_dim, hidden = 256, 128, 128
    S, B = 8, 2

    key = jax.random.PRNGKey(0)
    pkey, tkey, dkey = jax.random.split(key, 3)
    params = make_params(pkey, vocab_size, emb_dim, hidden)
    tokens = jax.random.randint(tkey, (S, B), 1, vocab_size, dtype=jnp.int32)

    logits = lm_transformer_forward(tokens, params, dropout_key=dkey)
    logits = jax.block_until_ready(logits)
    assert logits.shape == (S, B, vocab_size)
    assert bool(jnp.all(jnp.isfinite(logits)))
    print("KERNEL_OK")
</pallas_src>

<mosaic_0001>
module attributes {stable_mosaic.version = 11 : i64} {
  func.func @transformer_body_kernel(%arg0: memref<16x128xf32, #tpu.memory_space<vmem>>, %arg1: memref<16x128xf32, #tpu.memory_space<vmem>>, %arg2: memref<128x384xbf16, #tpu.memory_space<vmem>>, %arg3: memref<1x384xf32, #tpu.memory_space<vmem>>, %arg4: memref<128x128xbf16, #tpu.memory_space<vmem>>, %arg5: memref<1x128xf32, #tpu.memory_space<vmem>>, %arg6: memref<1x128xf32, #tpu.memory_space<vmem>>, %arg7: memref<1x128xf32, #tpu.memory_space<vmem>>, %arg8: memref<128x128xbf16, #tpu.memory_space<vmem>>, %arg9: memref<1x128xf32, #tpu.memory_space<vmem>>, %arg10: memref<128x128xbf16, #tpu.memory_space<vmem>>, %arg11: memref<1x128xf32, #tpu.memory_space<vmem>>, %arg12: memref<1x128xf32, #tpu.memory_space<vmem>>, %arg13: memref<1x128xf32, #tpu.memory_space<vmem>>, %arg14: memref<16x128xf32, #tpu.memory_space<vmem>>) attributes {dimension_semantics = [], scalar_prefetch = 0 : i64, scratch_operands = 0 : i64, tpu.core_type = #tpu.core_type<tc>} {
    %c0 = arith.constant 0 : index
    %c0_0 = arith.constant 0 : index
    %0 = vector.load %arg0[%c0, %c0_0] : memref<16x128xf32, #tpu.memory_space<vmem>>, vector<16x128xf32>
    %c0_1 = arith.constant 0 : index
    %c0_2 = arith.constant 0 : index
    %1 = vector.load %arg1[%c0_1, %c0_2] : memref<16x128xf32, #tpu.memory_space<vmem>>, vector<16x128xf32>
    %2 = arith.mulf %0, %1 : vector<16x128xf32>
    %3 = arith.truncf %2 : vector<16x128xf32> to vector<16x128xbf16>
    %c0_3 = arith.constant 0 : index
    %c0_4 = arith.constant 0 : index
    %4 = vector.load %arg2[%c0_3, %c0_4] : memref<128x384xbf16, #tpu.memory_space<vmem>>, vector<128x384xbf16>
    %cst = arith.constant dense<0.000000e+00> : vector<16x384xf32>
    %5 = tpu.matmul %3, %4, %cst {dimension_numbers = #tpu.dot_dimension_numbers<[1], [0], [0], [1], [0, 0, 1, 1], [], []>} : vector<16x128xbf16>, vector<128x384xbf16>, vector<16x384xf32> -> vector<16x384xf32>
    %c0_5 = arith.constant 0 : index
    %c0_6 = arith.constant 0 : index
    %6 = vector.load %arg3[%c0_5, %c0_6] : memref<1x384xf32, #tpu.memory_space<vmem>>, vector<1x384xf32>
    %7 = vector.broadcast %6 : vector<1x384xf32> to vector<16x384xf32>
    %8 = arith.addf %5, %7 : vector<16x384xf32>
    %9 = vector.extract_strided_slice %8 {offsets = [0, 0], sizes = [16, 128], strides = [1, 1]} : vector<16x384xf32> to vector<16x128xf32>
    %10 = vector.shape_cast %9 : vector<16x128xf32> to vector<2x8x128xf32>
    %11 = arith.truncf %10 : vector<2x8x128xf32> to vector<2x8x128xbf16>
    %12 = vector.extract_strided_slice %8 {offsets = [0, 128], sizes = [16, 128], strides = [1, 1]} : vector<16x384xf32> to vector<16x128xf32>
    %13 = vector.shape_cast %12 : vector<16x128xf32> to vector<2x8x128xf32>
    %14 = arith.truncf %13 : vector<2x8x128xf32> to vector<2x8x128xbf16>
    %15 = vector.extract_strided_slice %8 {offsets = [0, 256], sizes = [16, 128], strides = [1, 1]} : vector<16x384xf32> to vector<16x128xf32>
    %16 = vector.shape_cast %15 : vector<16x128xf32> to vector<2x8x128xf32>
    %17 = arith.truncf %16 : vector<2x8x128xf32> to vector<2x8x128xbf16>
    %18 = tpu.iota {dimensions = array<i32: 0>} : vector<8x8xi32>
    %19 = tpu.iota {dimensions = array<i32: 1>} : vector<8x8xi32>
    %20 = arith.cmpi sgt, %19, %18 : vector<8x8xi32>
    %21 = vector.shape_cast %20 : vector<8x8xi1> to vector<1x8x8xi1>
    %c0_7 = arith.constant 0 : index
    %c0_8 = arith.constant 0 : index
    %22 = vector.load %arg4[%c0_7, %c0_8] : memref<128x128xbf16, #tpu.memory_space<vmem>>, vector<128x128xbf16>
    %cst_9 = arith.constant 0.000000e+00 : f32
    %23 = vector.broadcast %cst_9 : f32 to vector<16x128xf32>
    %24 = vector.extract_strided_slice %11 {offsets = [0, 0, 0], sizes = [2, 8, 16], strides = [1, 1, 1]} : vector<2x8x128xbf16> to vector<2x8x16xbf16>
    %25 = vector.extract_strided_slice %14 {offsets = [0, 0, 0], sizes = [2, 8, 16], strides = [1, 1, 1]} : vector<2x8x128xbf16> to vector<2x8x16xbf16>
    %26 = vector.extract_strided_slice %17 {offsets = [0, 0, 0], sizes = [2, 8, 16], strides = [1, 1, 1]} : vector<2x8x128xbf16> to vector<2x8x16xbf16>
    "tpu.trace_start"() <{level = 10 : i32, message = "bqd,bkd->bqk"}> : () -> ()
    %cst_10 = arith.constant dense<0.000000e+00> : vector<2x8x8xf32>
    %27 = tpu.matmul %24, %25, %cst_10 {dimension_numbers = #tpu.dot_dimension_numbers<[2], [2], [1], [1], [0, 0, 0, 1, 1, 1], [0], [0]>} : vector<2x8x16xbf16>, vector<2x8x16xbf16>, vector<2x8x8xf32> -> vector<2x8x8xf32>
    "tpu.trace_stop"() : () -> ()
    %cst_11 = arith.constant 2.500000e-01 : f32
    %28 = vector.broadcast %cst_11 : f32 to vector<2x8x8xf32>
    %29 = arith.mulf %27, %28 : vector<2x8x8xf32>
    %cst_12 = arith.constant -1.000000e+30 : f32
    %30 = vector.shape_cast %21 : vector<1x8x8xi1> to vector<1x8x8xi1>
    %31 = vector.broadcast %30 : vector<1x8x8xi1> to vector<2x8x8xi1>
    %32 = vector.broadcast %cst_12 : f32 to vector<2x8x8xf32>
    %33 = arith.select %31, %32, %29 : vector<2x8x8xi1>, vector<2x8x8xf32>
    %cst_13 = arith.constant dense<0xFF800000> : vector<2x8xf32>
    %34 = vector.multi_reduction <maximumf>, %33, %cst_13 [2] : vector<2x8x8xf32> to vector<2x8xf32>
    %35 = vector.shape_cast %34 : vector<2x8xf32> to vector<2x8x1xf32>
    %36 = vector.broadcast %35 : vector<2x8x1xf32> to vector<2x8x8xf32>
    %37 = arith.subf %33, %36 : vector<2x8x8xf32>
    %38 = math.exp %37 : vector<2x8x8xf32>
    %cst_14 = arith.constant dense<0.000000e+00> : vector<2x8xf32>
    %39 = vector.multi_reduction <add>, %38, %cst_14 [2] : vector<2x8x8xf32> to vector<2x8xf32>
    %40 = vector.shape_cast %39 : vector<2x8xf32> to vector<2x8x1xf32>
    %41 = vector.broadcast %40 : vector<2x8x1xf32> to vector<2x8x8xf32>
    %42 = arith.divf %38, %41 : vector<2x8x8xf32>
    %43 = arith.truncf %42 : vector<2x8x8xf32> to vector<2x8x8xbf16>
    "tpu.trace_start"() <{level = 10 : i32, message = "bqk,bkd->bqd"}> : () -> ()
    %cst_15 = arith.constant dense<0.000000e+00> : vector<2x8x16xf32>
    %44 = tpu.matmul %43, %26, %cst_15 {dimension_numbers = #tpu.dot_dimension_numbers<[2], [1], [1], [2], [0, 0, 0, 1, 1, 2], [0], [0]>} : vector<2x8x8xbf16>, vector<2x8x16xbf16>, vector<2x8x16xf32> -> vector<2x8x16xf32>
    "tpu.trace_stop"() : () -> ()
    %45 = vector.shape_cast %44 : vector<2x8x16xf32> to vector<16x16xf32>
    %46 = arith.truncf %45 : vector<16x16xf32> to vector<16x16xbf16>
    %47 = vector.extract_strided_slice %22 {offsets = [0, 0], sizes = [16, 128], strides = [1, 1]} : vector<128x128xbf16> to vector<16x128xbf16>
    %cst_16 = arith.constant dense<0.000000e+00> : vector<16x128xf32>
    %48 = tpu.matmul %46, %47, %cst_16 {dimension_numbers = #tpu.dot_dimension_numbers<[1], [0], [0], [1], [0, 0, 1, 1], [], []>} : vector<16x16xbf16>, vector<16x128xbf16>, vector<16x128xf32> -> vector<16x128xf32>
    %49 = arith.addf %23, %48 : vector<16x128xf32>
    %50 = vector.extract_strided_slice %11 {offsets = [0, 0, 16], sizes = [2, 8, 16], strides = [1, 1, 1]} : vector<2x8x128xbf16> to vector<2x8x16xbf16>
    %51 = vector.extract_strided_slice %14 {offsets = [0, 0, 16], sizes = [2, 8, 16], strides = [1, 1, 1]} : vector<2x8x128xbf16> to vector<2x8x16xbf16>
    %52 = vector.extract_strided_slice %17 {offsets = [0, 0, 16], sizes = [2, 8, 16], strides = [1, 1, 1]} : vector<2x8x128xbf16> to vector<2x8x16xbf16>
    "tpu.trace_start"() <{level = 10 : i32, message = "bqd,bkd->bqk"}> : () -> ()
    %cst_17 = arith.constant dense<0.000000e+00> : vector<2x8x8xf32>
    %53 = tpu.matmul %50, %51, %cst_17 {dimension_numbers = #tpu.dot_dimension_numbers<[2], [2], [1], [1], [0, 0, 0, 1, 1, 1], [0], [0]>} : vector<2x8x16xbf16>, vector<2x8x16xbf16>, vector<2x8x8xf32> -> vector<2x8x8xf32>
    "tpu.trace_stop"() : () -> ()
    %cst_18 = arith.constant 2.500000e-01 : f32
    %54 = vector.broadcast %cst_18 : f32 to vector<2x8x8xf32>
    %55 = arith.mulf %53, %54 : vector<2x8x8xf32>
    %cst_19 = arith.constant -1.000000e+30 : f32
    %56 = vector.shape_cast %21 : vector<1x8x8xi1> to vector<1x8x8xi1>
    %57 = vector.broadcast %56 : vector<1x8x8xi1> to vector<2x8x8xi1>
    %58 = vector.broadcast %cst_19 : f32 to vector<2x8x8xf32>
    %59 = arith.select %57, %58, %55 : vector<2x8x8xi1>, vector<2x8x8xf32>
    %cst_20 = arith.constant dense<0xFF800000> : vector<2x8xf32>
    %60 = vector.multi_reduction <maximumf>, %59, %cst_20 [2] : vector<2x8x8xf32> to vector<2x8xf32>
    %61 = vector.shape_cast %60 : vector<2x8xf32> to vector<2x8x1xf32>
    %62 = vector.broadcast %61 : vector<2x8x1xf32> to vector<2x8x8xf32>
    %63 = arith.subf %59, %62 : vector<2x8x8xf32>
    %64 = math.exp %63 : vector<2x8x8xf32>
    %cst_21 = arith.constant dense<0.000000e+00> : vector<2x8xf32>
    %65 = vector.multi_reduction <add>, %64, %cst_21 [2] : vector<2x8x8xf32> to vector<2x8xf32>
    %66 = vector.shape_cast %65 : vector<2x8xf32> to vector<2x8x1xf32>
    %67 = vector.broadcast %66 : vector<2x8x1xf32> to vector<2x8x8xf32>
    %68 = arith.divf %64, %67 : vector<2x8x8xf32>
    %69 = arith.truncf %68 : vector<2x8x8xf32> to vector<2x8x8xbf16>
    "tpu.trace_start"() <{level = 10 : i32, message = "bqk,bkd->bqd"}> : () -> ()
    %cst_22 = arith.constant dense<0.000000e+00> : vector<2x8x16xf32>
    %70 = tpu.matmul %69, %52, %cst_22 {dimension_numbers = #tpu.dot_dimension_numbers<[2], [1], [1], [2], [0, 0, 0, 1, 1, 2], [0], [0]>} : vector<2x8x8xbf16>, vector<2x8x16xbf16>, vector<2x8x16xf32> -> vector<2x8x16xf32>
    "tpu.trace_stop"() : () -> ()
    %71 = vector.shape_cast %70 : vector<2x8x16xf32> to vector<16x16xf32>
    %72 = arith.truncf %71 : vector<16x16xf32> to vector<16x16xbf16>
    %73 = vector.extract_strided_slice %22 {offsets = [16, 0], sizes = [16, 128], strides = [1, 1]} : vector<128x128xbf16> to vector<16x128xbf16>
    %cst_23 = arith.constant dense<0.000000e+00> : vector<16x128xf32>
    %74 = tpu.matmul %72, %73, %cst_23 {dimension_numbers = #tpu.dot_dimension_numbers<[1], [0], [0], [1], [0, 0, 1, 1], [], []>} : vector<16x16xbf16>, vector<16x128xbf16>, vector<16x128xf32> -> vector<16x128xf32>
    %75 = arith.addf %49, %74 : vector<16x128xf32>
    %76 = vector.extract_strided_slice %11 {offsets = [0, 0, 32], sizes = [2, 8, 16], strides = [1, 1, 1]} : vector<2x8x128xbf16> to vector<2x8x16xbf16>
    %77 = vector.extract_strided_slice %14 {offsets = [0, 0, 32], sizes = [2, 8, 16], strides = [1, 1, 1]} : vector<2x8x128xbf16> to vector<2x8x16xbf16>
    %78 = vector.extract_strided_slice %17 {offsets = [0, 0, 32], sizes = [2, 8, 16], strides = [1, 1, 1]} : vector<2x8x128xbf16> to vector<2x8x16xbf16>
    "tpu.trace_start"() <{level = 10 : i32, message = "bqd,bkd->bqk"}> : () -> ()
    %cst_24 = arith.constant dense<0.000000e+00> : vector<2x8x8xf32>
    %79 = tpu.matmul %76, %77, %cst_24 {dimension_numbers = #tpu.dot_dimension_numbers<[2], [2], [1], [1], [0, 0, 0, 1, 1, 1], [0], [0]>} : vector<2x8x16xbf16>, vector<2x8x16xbf16>, vector<2x8x8xf32> -> vector<2x8x8xf32>
    "tpu.trace_stop"() : () -> ()
    %cst_25 = arith.constant 2.500000e-01 : f32
    %80 = vector.broadcast %cst_25 : f32 to vector<2x8x8xf32>
    %81 = arith.mulf %79, %80 : vector<2x8x8xf32>
    %cst_26 = arith.constant -1.000000e+30 : f32
    %82 = vector.shape_cast %21 : vector<1x8x8xi1> to vector<1x8x8xi1>
    %83 = vector.broadcast %82 : vector<1x8x8xi1> to vector<2x8x8xi1>
    %84 = vector.broadcast %cst_26 : f32 to vector<2x8x8xf32>
    %85 = arith.select %83, %84, %81 : vector<2x8x8xi1>, vector<2x8x8xf32>
    %cst_27 = arith.constant dense<0xFF800000> : vector<2x8xf32>
    %86 = vector.multi_reduction <maximumf>, %85, %cst_27 [2] : vector<2x8x8xf32> to vector<2x8xf32>
    %87 = vector.shape_cast %86 : vector<2x8xf32> to vector<2x8x1xf32>
    %88 = vector.broadcast %87 : vector<2x8x1xf32> to vector<2x8x8xf32>
    %89 = arith.subf %85, %88 : vector<2x8x8xf32>
    %90 = math.exp %89 : vector<2x8x8xf32>
    %cst_28 = arith.constant dense<0.000000e+00> : vector<2x8xf32>
    %91 = vector.multi_reduction <add>, %90, %cst_28 [2] : vector<2x8x8xf32> to vector<2x8xf32>
    %92 = vector.shape_cast %91 : vector<2x8xf32> to vector<2x8x1xf32>
    %93 = vector.broadcast %92 : vector<2x8x1xf32> to vector<2x8x8xf32>
    %94 = arith.divf %90, %93 : vector<2x8x8xf32>
    %95 = arith.truncf %94 : vector<2x8x8xf32> to vector<2x8x8xbf16>
    "tpu.trace_start"() <{level = 10 : i32, message = "bqk,bkd->bqd"}> : () -> ()
    %cst_29 = arith.constant dense<0.000000e+00> : vector<2x8x16xf32>
    %96 = tpu.matmul %95, %78, %cst_29 {dimension_numbers = #tpu.dot_dimension_numbers<[2], [1], [1], [2], [0, 0, 0, 1, 1, 2], [0], [0]>} : vector<2x8x8xbf16>, vector<2x8x16xbf16>, vector<2x8x16xf32> -> vector<2x8x16xf32>
    "tpu.trace_stop"() : () -> ()
    %97 = vector.shape_cast %96 : vector<2x8x16xf32> to vector<16x16xf32>
    %98 = arith.truncf %97 : vector<16x16xf32> to vector<16x16xbf16>
    %99 = vector.extract_strided_slice %22 {offsets = [32, 0], sizes = [16, 128], strides = [1, 1]} : vector<128x128xbf16> to vector<16x128xbf16>
    %cst_30 = arith.constant dense<0.000000e+00> : vector<16x128xf32>
    %100 = tpu.matmul %98, %99, %cst_30 {dimension_numbers = #tpu.dot_dimension_numbers<[1], [0], [0], [1], [0, 0, 1, 1], [], []>} : vector<16x16xbf16>, vector<16x128xbf16>, vector<16x128xf32> -> vector<16x128xf32>
    %101 = arith.addf %75, %100 : vector<16x128xf32>
    %102 = vector.extract_strided_slice %11 {offsets = [0, 0, 48], sizes = [2, 8, 16], strides = [1, 1, 1]} : vector<2x8x128xbf16> to vector<2x8x16xbf16>
    %103 = vector.extract_strided_slice %14 {offsets = [0, 0, 48], sizes = [2, 8, 16], strides = [1, 1, 1]} : vector<2x8x128xbf16> to vector<2x8x16xbf16>
    %104 = vector.extract_strided_slice %17 {offsets = [0, 0, 48], sizes = [2, 8, 16], strides = [1, 1, 1]} : vector<2x8x128xbf16> to vector<2x8x16xbf16>
    "tpu.trace_start"() <{level = 10 : i32, message = "bqd,bkd->bqk"}> : () -> ()
    %cst_31 = arith.constant dense<0.000000e+00> : vector<2x8x8xf32>
    %105 = tpu.matmul %102, %103, %cst_31 {dimension_numbers = #tpu.dot_dimension_numbers<[2], [2], [1], [1], [0, 0, 0, 1, 1, 1], [0], [0]>} : vector<2x8x16xbf16>, vector<2x8x16xbf16>, vector<2x8x8xf32> -> vector<2x8x8xf32>
    "tpu.trace_stop"() : () -> ()
    %cst_32 = arith.constant 2.500000e-01 : f32
    %106 = vector.broadcast %cst_32 : f32 to vector<2x8x8xf32>
    %107 = arith.mulf %105, %106 : vector<2x8x8xf32>
    %cst_33 = arith.constant -1.000000e+30 : f32
    %108 = vector.shape_cast %21 : vector<1x8x8xi1> to vector<1x8x8xi1>
    %109 = vector.broadcast %108 : vector<1x8x8xi1> to vector<2x8x8xi1>
    %110 = vector.broadcast %cst_33 : f32 to vector<2x8x8xf32>
    %111 = arith.select %109, %110, %107 : vector<2x8x8xi1>, vector<2x8x8xf32>
    %cst_34 = arith.constant dense<0xFF800000> : vector<2x8xf32>
    %112 = vector.multi_reduction <maximumf>, %111, %cst_34 [2] : vector<2x8x8xf32> to vector<2x8xf32>
    %113 = vector.shape_cast %112 : vector<2x8xf32> to vector<2x8x1xf32>
    %114 = vector.broadcast %113 : vector<2x8x1xf32> to vector<2x8x8xf32>
    %115 = arith.subf %111, %114 : vector<2x8x8xf32>
    %116 = math.exp %115 : vector<2x8x8xf32>
    %cst_35 = arith.constant dense<0.000000e+00> : vector<2x8xf32>
    %117 = vector.multi_reduction <add>, %116, %cst_35 [2] : vector<2x8x8xf32> to vector<2x8xf32>
    %118 = vector.shape_cast %117 : vector<2x8xf32> to vector<2x8x1xf32>
    %119 = vector.broadcast %118 : vector<2x8x1xf32> to vector<2x8x8xf32>
    %120 = arith.divf %116, %119 : vector<2x8x8xf32>
    %121 = arith.truncf %120 : vector<2x8x8xf32> to vector<2x8x8xbf16>
    "tpu.trace_start"() <{level = 10 : i32, message = "bqk,bkd->bqd"}> : () -> ()
    %cst_36 = arith.constant dense<0.000000e+00> : vector<2x8x16xf32>
    %122 = tpu.matmul %121, %104, %cst_36 {dimension_numbers = #tpu.dot_dimension_numbers<[2], [1], [1], [2], [0, 0, 0, 1, 1, 2], [0], [0]>} : vector<2x8x8xbf16>, vector<2x8x16xbf16>, vector<2x8x16xf32> -> vector<2x8x16xf32>
    "tpu.trace_stop"() : () -> ()
    %123 = vector.shape_cast %122 : vector<2x8x16xf32> to vector<16x16xf32>
    %124 = arith.truncf %123 : vector<16x16xf32> to vector<16x16xbf16>
    %125 = vector.extract_strided_slice %22 {offsets = [48, 0], sizes = [16, 128], strides = [1, 1]} : vector<128x128xbf16> to vector<16x128xbf16>
    %cst_37 = arith.constant dense<0.000000e+00> : vector<16x128xf32>
    %126 = tpu.matmul %124, %125, %cst_37 {dimension_numbers = #tpu.dot_dimension_numbers<[1], [0], [0], [1], [0, 0, 1, 1], [], []>} : vector<16x16xbf16>, vector<16x128xbf16>, vector<16x128xf32> -> vector<16x128xf32>
    %127 = arith.addf %101, %126 : vector<16x128xf32>
    %128 = vector.extract_strided_slice %11 {offsets = [0, 0, 64], sizes = [2, 8, 16], strides = [1, 1, 1]} : vector<2x8x128xbf16> to vector<2x8x16xbf16>
    %129 = vector.extract_strided_slice %14 {offsets = [0, 0, 64], sizes = [2, 8, 16], strides = [1, 1, 1]} : vector<2x8x128xbf16> to vector<2x8x16xbf16>
    %130 = vector.extract_strided_slice %17 {offsets = [0, 0, 64], sizes = [2, 8, 16], strides = [1, 1, 1]} : vector<2x8x128xbf16> to vector<2x8x16xbf16>
    "tpu.trace_start"() <{level = 10 : i32, message = "bqd,bkd->bqk"}> : () -> ()
    %cst_38 = arith.constant dense<0.000000e+00> : vector<2x8x8xf32>
    %131 = tpu.matmul %128, %129, %cst_38 {dimension_numbers = #tpu.dot_dimension_numbers<[2], [2], [1], [1], [0, 0, 0, 1, 1, 1], [0], [0]>} : vector<2x8x16xbf16>, vector<2x8x16xbf16>, vector<2x8x8xf32> -> vector<2x8x8xf32>
    "tpu.trace_stop"() : () -> ()
    %cst_39 = arith.constant 2.500000e-01 : f32
    %132 = vector.broadcast %cst_39 : f32 to vector<2x8x8xf32>
    %133 = arith.mulf %131, %132 : vector<2x8x8xf32>
    %cst_40 = arith.constant -1.000000e+30 : f32
    %134 = vector.shape_cast %21 : vector<1x8x8xi1> to vector<1x8x8xi1>
    %135 = vector.broadcast %134 : vector<1x8x8xi1> to vector<2x8x8xi1>
    %136 = vector.broadcast %cst_40 : f32 to vector<2x8x8xf32>
    %137 = arith.select %135, %136, %133 : vector<2x8x8xi1>, vector<2x8x8xf32>
    %cst_41 = arith.constant dense<0xFF800000> : vector<2x8xf32>
    %138 = vector.multi_reduction <maximumf>, %137, %cst_41 [2] : vector<2x8x8xf32> to vector<2x8xf32>
    %139 = vector.shape_cast %138 : vector<2x8xf32> to vector<2x8x1xf32>
    %140 = vector.broadcast %139 : vector<2x8x1xf32> to vector<2x8x8xf32>
    %141 = arith.subf %137, %140 : vector<2x8x8xf32>
    %142 = math.exp %141 : vector<2x8x8xf32>
    %cst_42 = arith.constant dense<0.000000e+00> : vector<2x8xf32>
    %143 = vector.multi_reduction <add>, %142, %cst_42 [2] : vector<2x8x8xf32> to vector<2x8xf32>
    %144 = vector.shape_cast %143 : vector<2x8xf32> to vector<2x8x1xf32>
    %145 = vector.broadcast %144 : vector<2x8x1xf32> to vector<2x8x8xf32>
    %146 = arith.divf %142, %145 : vector<2x8x8xf32>
    %147 = arith.truncf %146 : vector<2x8x8xf32> to vector<2x8x8xbf16>
    "tpu.trace_start"() <{level = 10 : i32, message = "bqk,bkd->bqd"}> : () -> ()
    %cst_43 = arith.constant dense<0.000000e+00> : vector<2x8x16xf32>
    %148 = tpu.matmul %147, %130, %cst_43 {dimension_numbers = #tpu.dot_dimension_numbers<[2], [1], [1], [2], [0, 0, 0, 1, 1, 2], [0], [0]>} : vector<2x8x8xbf16>, vector<2x8x16xbf16>, vector<2x8x16xf32> -> vector<2x8x16xf32>
    "tpu.trace_stop"() : () -> ()
    %149 = vector.shape_cast %148 : vector<2x8x16xf32> to vector<16x16xf32>
    %150 = arith.truncf %149 : vector<16x16xf32> to vector<16x16xbf16>
    %151 = vector.extract_strided_slice %22 {offsets = [64, 0], sizes = [16, 128], strides = [1, 1]} : vector<128x128xbf16> to vector<16x128xbf16>
    %cst_44 = arith.constant dense<0.000000e+00> : vector<16x128xf32>
    %152 = tpu.matmul %150, %151, %cst_44 {dimension_numbers = #tpu.dot_dimension_numbers<[1], [0], [0], [1], [0, 0, 1, 1], [], []>} : vector<16x16xbf16>, vector<16x128xbf16>, vector<16x128xf32> -> vector<16x128xf32>
    %153 = arith.addf %127, %152 : vector<16x128xf32>
    %154 = vector.extract_strided_slice %11 {offsets = [0, 0, 80], sizes = [2, 8, 16], strides = [1, 1, 1]} : vector<2x8x128xbf16> to vector<2x8x16xbf16>
    %155 = vector.extract_strided_slice %14 {offsets = [0, 0, 80], sizes = [2, 8, 16], strides = [1, 1, 1]} : vector<2x8x128xbf16> to vector<2x8x16xbf16>
    %156 = vector.extract_strided_slice %17 {offsets = [0, 0, 80], sizes = [2, 8, 16], strides = [1, 1, 1]} : vector<2x8x128xbf16> to vector<2x8x16xbf16>
    "tpu.trace_start"() <{level = 10 : i32, message = "bqd,bkd->bqk"}> : () -> ()
    %cst_45 = arith.constant dense<0.000000e+00> : vector<2x8x8xf32>
    %157 = tpu.matmul %154, %155, %cst_45 {dimension_numbers = #tpu.dot_dimension_numbers<[2], [2], [1], [1], [0, 0, 0, 1, 1, 1], [0], [0]>} : vector<2x8x16xbf16>, vector<2x8x16xbf16>, vector<2x8x8xf32> -> vector<2x8x8xf32>
    "tpu.trace_stop"() : () -> ()
    %cst_46 = arith.constant 2.500000e-01 : f32
    %158 = vector.broadcast %cst_46 : f32 to vector<2x8x8xf32>
    %159 = arith.mulf %157, %158 : vector<2x8x8xf32>
    %cst_47 = arith.constant -1.000000e+30 : f32
    %160 = vector.shape_cast %21 : vector<1x8x8xi1> to vector<1x8x8xi1>
    %161 = vector.broadcast %160 : vector<1x8x8xi1> to vector<2x8x8xi1>
    %162 = vector.broadcast %cst_47 : f32 to vector<2x8x8xf32>
    %163 = arith.select %161, %162, %159 : vector<2x8x8xi1>, vector<2x8x8xf32>
    %cst_48 = arith.constant dense<0xFF800000> : vector<2x8xf32>
    %164 = vector.multi_reduction <maximumf>, %163, %cst_48 [2] : vector<2x8x8xf32> to vector<2x8xf32>
    %165 = vector.shape_cast %164 : vector<2x8xf32> to vector<2x8x1xf32>
    %166 = vector.broadcast %165 : vector<2x8x1xf32> to vector<2x8x8xf32>
    %167 = arith.subf %163, %166 : vector<2x8x8xf32>
    %168 = math.exp %167 : vector<2x8x8xf32>
    %cst_49 = arith.constant dense<0.000000e+00> : vector<2x8xf32>
    %169 = vector.multi_reduction <add>, %168, %cst_49 [2] : vector<2x8x8xf32> to vector<2x8xf32>
    %170 = vector.shape_cast %169 : vector<2x8xf32> to vector<2x8x1xf32>
    %171 = vector.broadcast %170 : vector<2x8x1xf32> to vector<2x8x8xf32>
    %172 = arith.divf %168, %171 : vector<2x8x8xf32>
    %173 = arith.truncf %172 : vector<2x8x8xf32> to vector<2x8x8xbf16>
    "tpu.trace_start"() <{level = 10 : i32, message = "bqk,bkd->bqd"}> : () -> ()
    %cst_50 = arith.constant dense<0.000000e+00> : vector<2x8x16xf32>
    %174 = tpu.matmul %173, %156, %cst_50 {dimension_numbers = #tpu.dot_dimension_numbers<[2], [1], [1], [2], [0, 0, 0, 1, 1, 2], [0], [0]>} : vector<2x8x8xbf16>, vector<2x8x16xbf16>, vector<2x8x16xf32> -> vector<2x8x16xf32>
    "tpu.trace_stop"() : () -> ()
    %175 = vector.shape_cast %174 : vector<2x8x16xf32> to vector<16x16xf32>
    %176 = arith.truncf %175 : vector<16x16xf32> to vector<16x16xbf16>
    %177 = vector.extract_strided_slice %22 {offsets = [80, 0], sizes = [16, 128], strides = [1, 1]} : vector<128x128xbf16> to vector<16x128xbf16>
    %cst_51 = arith.constant dense<0.000000e+00> : vector<16x128xf32>
    %178 = tpu.matmul %176, %177, %cst_51 {dimension_numbers = #tpu.dot_dimension_numbers<[1], [0], [0], [1], [0, 0, 1, 1], [], []>} : vector<16x16xbf16>, vector<16x128xbf16>, vector<16x128xf32> -> vector<16x128xf32>
    %179 = arith.addf %153, %178 : vector<16x128xf32>
    %180 = vector.extract_strided_slice %11 {offsets = [0, 0, 96], sizes = [2, 8, 16], strides = [1, 1, 1]} : vector<2x8x128xbf16> to vector<2x8x16xbf16>
    %181 = vector.extract_strided_slice %14 {offsets = [0, 0, 96], sizes = [2, 8, 16], strides = [1, 1, 1]} : vector<2x8x128xbf16> to vector<2x8x16xbf16>
    %182 = vector.extract_strided_slice %17 {offsets = [0, 0, 96], sizes = [2, 8, 16], strides = [1, 1, 1]} : vector<2x8x128xbf16> to vector<2x8x16xbf16>
    "tpu.trace_start"() <{level = 10 : i32, message = "bqd,bkd->bqk"}> : () -> ()
    %cst_52 = arith.constant dense<0.000000e+00> : vector<2x8x8xf32>
    %183 = tpu.matmul %180, %181, %cst_52 {dimension_numbers = #tpu.dot_dimension_numbers<[2], [2], [1], [1], [0, 0, 0, 1, 1, 1], [0], [0]>} : vector<2x8x16xbf16>, vector<2x8x16xbf16>, vector<2x8x8xf32> -> vector<2x8x8xf32>
    "tpu.trace_stop"() : () -> ()
    %cst_53 = arith.constant 2.500000e-01 : f32
    %184 = vector.broadcast %cst_53 : f32 to vector<2x8x8xf32>
    %185 = arith.mulf %183, %184 : vector<2x8x8xf32>
    %cst_54 = arith.constant -1.000000e+30 : f32
    %186 = vector.shape_cast %21 : vector<1x8x8xi1> to vector<1x8x8xi1>
    %187 = vector.broadcast %186 : vector<1x8x8xi1> to vector<2x8x8xi1>
    %188 = vector.broadcast %cst_54 : f32 to vector<2x8x8xf32>
    %189 = arith.select %187, %188, %185 : vector<2x8x8xi1>, vector<2x8x8xf32>
    %cst_55 = arith.constant dense<0xFF800000> : vector<2x8xf32>
    %190 = vector.multi_reduction <maximumf>, %189, %cst_55 [2] : vector<2x8x8xf32> to vector<2x8xf32>
    %191 = vector.shape_cast %190 : vector<2x8xf32> to vector<2x8x1xf32>
    %192 = vector.broadcast %191 : vector<2x8x1xf32> to vector<2x8x8xf32>
    %193 = arith.subf %189, %192 : vector<2x8x8xf32>
    %194 = math.exp %193 : vector<2x8x8xf32>
    %cst_56 = arith.constant dense<0.000000e+00> : vector<2x8xf32>
    %195 = vector.multi_reduction <add>, %194, %cst_56 [2] : vector<2x8x8xf32> to vector<2x8xf32>
    %196 = vector.shape_cast %195 : vector<2x8xf32> to vector<2x8x1xf32>
    %197 = vector.broadcast %196 : vector<2x8x1xf32> to vector<2x8x8xf32>
    %198 = arith.divf %194, %197 : vector<2x8x8xf32>
    %199 = arith.truncf %198 : vector<2x8x8xf32> to vector<2x8x8xbf16>
    "tpu.trace_start"() <{level = 10 : i32, message = "bqk,bkd->bqd"}> : () -> ()
    %cst_57 = arith.constant dense<0.000000e+00> : vector<2x8x16xf32>
    %200 = tpu.matmul %199, %182, %cst_57 {dimension_numbers = #tpu.dot_dimension_numbers<[2], [1], [1], [2], [0, 0, 0, 1, 1, 2], [0], [0]>} : vector<2x8x8xbf16>, vector<2x8x16xbf16>, vector<2x8x16xf32> -> vector<2x8x16xf32>
    "tpu.trace_stop"() : () -> ()
    %201 = vector.shape_cast %200 : vector<2x8x16xf32> to vector<16x16xf32>
    %202 = arith.truncf %201 : vector<16x16xf32> to vector<16x16xbf16>
    %203 = vector.extract_strided_slice %22 {offsets = [96, 0], sizes = [16, 128], strides = [1, 1]} : vector<128x128xbf16> to vector<16x128xbf16>
    %cst_58 = arith.constant dense<0.000000e+00> : vector<16x128xf32>
    %204 = tpu.matmul %202, %203, %cst_58 {dimension_numbers = #tpu.dot_dimension_numbers<[1], [0], [0], [1], [0, 0, 1, 1], [], []>} : vector<16x16xbf16>, vector<16x128xbf16>, vector<16x128xf32> -> vector<16x128xf32>
    %205 = arith.addf %179, %204 : vector<16x128xf32>
    %206 = vector.extract_strided_slice %11 {offsets = [0, 0, 112], sizes = [2, 8, 16], strides = [1, 1, 1]} : vector<2x8x128xbf16> to vector<2x8x16xbf16>
    %207 = vector.extract_strided_slice %14 {offsets = [0, 0, 112], sizes = [2, 8, 16], strides = [1, 1, 1]} : vector<2x8x128xbf16> to vector<2x8x16xbf16>
    %208 = vector.extract_strided_slice %17 {offsets = [0, 0, 112], sizes = [2, 8, 16], strides = [1, 1, 1]} : vector<2x8x128xbf16> to vector<2x8x16xbf16>
    "tpu.trace_start"() <{level = 10 : i32, message = "bqd,bkd->bqk"}> : () -> ()
    %cst_59 = arith.constant dense<0.000000e+00> : vector<2x8x8xf32>
    %209 = tpu.matmul %206, %207, %cst_59 {dimension_numbers = #tpu.dot_dimension_numbers<[2], [2], [1], [1], [0, 0, 0, 1, 1, 1], [0], [0]>} : vector<2x8x16xbf16>, vector<2x8x16xbf16>, vector<2x8x8xf32> -> vector<2x8x8xf32>
    "tpu.trace_stop"() : () -> ()
    %cst_60 = arith.constant 2.500000e-01 : f32
    %210 = vector.broadcast %cst_60 : f32 to vector<2x8x8xf32>
    %211 = arith.mulf %209, %210 : vector<2x8x8xf32>
    %cst_61 = arith.constant -1.000000e+30 : f32
    %212 = vector.shape_cast %21 : vector<1x8x8xi1> to vector<1x8x8xi1>
    %213 = vector.broadcast %212 : vector<1x8x8xi1> to vector<2x8x8xi1>
    %214 = vector.broadcast %cst_61 : f32 to vector<2x8x8xf32>
    %215 = arith.select %213, %214, %211 : vector<2x8x8xi1>, vector<2x8x8xf32>
    %cst_62 = arith.constant dense<0xFF800000> : vector<2x8xf32>
    %216 = vector.multi_reduction <maximumf>, %215, %cst_62 [2] : vector<2x8x8xf32> to vector<2x8xf32>
    %217 = vector.shape_cast %216 : vector<2x8xf32> to vector<2x8x1xf32>
    %218 = vector.broadcast %217 : vector<2x8x1xf32> to vector<2x8x8xf32>
    %219 = arith.subf %215, %218 : vector<2x8x8xf32>
    %220 = math.exp %219 : vector<2x8x8xf32>
    %cst_63 = arith.constant dense<0.000000e+00> : vector<2x8xf32>
    %221 = vector.multi_reduction <add>, %220, %cst_63 [2] : vector<2x8x8xf32> to vector<2x8xf32>
    %222 = vector.shape_cast %221 : vector<2x8xf32> to vector<2x8x1xf32>
    %223 = vector.broadcast %222 : vector<2x8x1xf32> to vector<2x8x8xf32>
    %224 = arith.divf %220, %223 : vector<2x8x8xf32>
    %225 = arith.truncf %224 : vector<2x8x8xf32> to vector<2x8x8xbf16>
    "tpu.trace_start"() <{level = 10 : i32, message = "bqk,bkd->bqd"}> : () -> ()
    %cst_64 = arith.constant dense<0.000000e+00> : vector<2x8x16xf32>
    %226 = tpu.matmul %225, %208, %cst_64 {dimension_numbers = #tpu.dot_dimension_numbers<[2], [1], [1], [2], [0, 0, 0, 1, 1, 2], [0], [0]>} : vector<2x8x8xbf16>, vector<2x8x16xbf16>, vector<2x8x16xf32> -> vector<2x8x16xf32>
    "tpu.trace_stop"() : () -> ()
    %227 = vector.shape_cast %226 : vector<2x8x16xf32> to vector<16x16xf32>
    %228 = arith.truncf %227 : vector<16x16xf32> to vector<16x16xbf16>
    %229 = vector.extract_strided_slice %22 {offsets = [112, 0], sizes = [16, 128], strides = [1, 1]} : vector<128x128xbf16> to vector<16x128xbf16>
    %cst_65 = arith.constant dense<0.000000e+00> : vector<16x128xf32>
    %230 = tpu.matmul %228, %229, %cst_65 {dimension_numbers = #tpu.dot_dimension_numbers<[1], [0], [0], [1], [0, 0, 1, 1], [], []>} : vector<16x16xbf16>, vector<16x128xbf16>, vector<16x128xf32> -> vector<16x128xf32>
    %231 = arith.addf %205, %230 : vector<16x128xf32>
    %c0_66 = arith.constant 0 : index
    %c0_67 = arith.constant 0 : index
    %232 = vector.load %arg5[%c0_66, %c0_67] : memref<1x128xf32, #tpu.memory_space<vmem>>, vector<1x128xf32>
    %233 = vector.broadcast %232 : vector<1x128xf32> to vector<16x128xf32>
    %234 = arith.addf %231, %233 : vector<16x128xf32>
    %235 = arith.addf %2, %234 : vector<16x128xf32>
    %c0_68 = arith.constant 0 : index
    %c0_69 = arith.constant 0 : index
    %236 = vector.load %arg6[%c0_68, %c0_69] : memref<1x128xf32, #tpu.memory_space<vmem>>, vector<1x128xf32>
    %c0_70 = arith.constant 0 : index
    %c0_71 = arith.constant 0 : index
    %237 = vector.load %arg7[%c0_70, %c0_71] : memref<1x128xf32, #tpu.memory_space<vmem>>, vector<1x128xf32>
    %cst_72 = arith.constant dense<0.000000e+00> : vector<16xf32>
    %238 = vector.multi_reduction <add>, %235, %cst_72 [1] : vector<16x128xf32> to vector<16xf32>
    %239 = vector.shape_cast %238 : vector<16xf32> to vector<16x1xf32>
    %cst_73 = arith.constant 1.280000e+02 : f32
    %240 = vector.broadcast %cst_73 : f32 to vector<16x1xf32>
    %241 = arith.divf %239, %240 : vector<16x1xf32>
    %242 = vector.broadcast %241 : vector<16x1xf32> to vector<16x128xf32>
    %243 = arith.subf %235, %242 : vector<16x128xf32>
    %244 = arith.mulf %243, %243 : vector<16x128xf32>
    %cst_74 = arith.constant dense<0.000000e+00> : vector<16xf32>
    %245 = vector.multi_reduction <add>, %244, %cst_74 [1] : vector<16x128xf32> to vector<16xf32>
    %246 = vector.shape_cast %245 : vector<16xf32> to vector<16x1xf32>
    %cst_75 = arith.constant 1.280000e+02 : f32
    %247 = vector.broadcast %cst_75 : f32 to vector<16x1xf32>
    %248 = arith.divf %246, %247 : vector<16x1xf32>
    %249 = vector.broadcast %241 : vector<16x1xf32> to vector<16x128xf32>
    %250 = arith.subf %235, %249 : vector<16x128xf32>
    %cst_76 = arith.constant 9.99999974E-6 : f32
    %251 = vector.broadcast %cst_76 : f32 to vector<16x1xf32>
    %252 = arith.addf %248, %251 : vector<16x1xf32>
    %253 = math.rsqrt %252 : vector<16x1xf32>
    %254 = vector.broadcast %253 : vector<16x1xf32> to vector<16x128xf32>
    %255 = arith.mulf %250, %254 : vector<16x128xf32>
    %256 = vector.broadcast %236 : vector<1x128xf32> to vector<16x128xf32>
    %257 = arith.mulf %255, %256 : vector<16x128xf32>
    %258 = vector.broadcast %237 : vector<1x128xf32> to vector<16x128xf32>
    %259 = arith.addf %257, %258 : vector<16x128xf32>
    %260 = arith.truncf %259 : vector<16x128xf32> to vector<16x128xbf16>
    %c0_77 = arith.constant 0 : index
    %c0_78 = arith.constant 0 : index
    %261 = vector.load %arg8[%c0_77, %c0_78] : memref<128x128xbf16, #tpu.memory_space<vmem>>, vector<128x128xbf16>
    %cst_79 = arith.constant dense<0.000000e+00> : vector<16x128xf32>
    %262 = tpu.matmul %260, %261, %cst_79 {dimension_numbers = #tpu.dot_dimension_numbers<[1], [0], [0], [1], [0, 0, 1, 1], [], []>} : vector<16x128xbf16>, vector<128x128xbf16>, vector<16x128xf32> -> vector<16x128xf32>
    %c0_80 = arith.constant 0 : index
    %c0_81 = arith.constant 0 : index
    %263 = vector.load %arg9[%c0_80, %c0_81] : memref<1x128xf32, #tpu.memory_space<vmem>>, vector<1x128xf32>
    %264 = vector.broadcast %263 : vector<1x128xf32> to vector<16x128xf32>
    %265 = arith.addf %262, %264 : vector<16x128xf32>
    %cst_82 = arith.constant 0.000000e+00 : f32
    %266 = vector.broadcast %cst_82 : f32 to vector<16x128xf32>
    %267 = arith.maximumf %265, %266 : vector<16x128xf32>
    %268 = arith.truncf %267 : vector<16x128xf32> to vector<16x128xbf16>
    %c0_83 = arith.constant 0 : index
    %c0_84 = arith.constant 0 : index
    %269 = vector.load %arg10[%c0_83, %c0_84] : memref<128x128xbf16, #tpu.memory_space<vmem>>, vector<128x128xbf16>
    %cst_85 = arith.constant dense<0.000000e+00> : vector<16x128xf32>
    %270 = tpu.matmul %268, %269, %cst_85 {dimension_numbers = #tpu.dot_dimension_numbers<[1], [0], [0], [1], [0, 0, 1, 1], [], []>} : vector<16x128xbf16>, vector<128x128xbf16>, vector<16x128xf32> -> vector<16x128xf32>
    %c0_86 = arith.constant 0 : index
    %c0_87 = arith.constant 0 : index
    %271 = vector.load %arg11[%c0_86, %c0_87] : memref<1x128xf32, #tpu.memory_space<vmem>>, vector<1x128xf32>
    %272 = vector.broadcast %271 : vector<1x128xf32> to vector<16x128xf32>
    %273 = arith.addf %270, %272 : vector<16x128xf32>
    %274 = arith.addf %259, %273 : vector<16x128xf32>
    %c0_88 = arith.constant 0 : index
    %c0_89 = arith.constant 0 : index
    %275 = vector.load %arg12[%c0_88, %c0_89] : memref<1x128xf32, #tpu.memory_space<vmem>>, vector<1x128xf32>
    %c0_90 = arith.constant 0 : index
    %c0_91 = arith.constant 0 : index
    %276 = vector.load %arg13[%c0_90, %c0_91] : memref<1x128xf32, #tpu.memory_space<vmem>>, vector<1x128xf32>
    %cst_92 = arith.constant dense<0.000000e+00> : vector<16xf32>
    %277 = vector.multi_reduction <add>, %274, %cst_92 [1] : vector<16x128xf32> to vector<16xf32>
    %278 = vector.shape_cast %277 : vector<16xf32> to vector<16x1xf32>
    %cst_93 = arith.constant 1.280000e+02 : f32
    %279 = vector.broadcast %cst_93 : f32 to vector<16x1xf32>
    %280 = arith.divf %278, %279 : vector<16x1xf32>
    %281 = vector.broadcast %280 : vector<16x1xf32> to vector<16x128xf32>
    %282 = arith.subf %274, %281 : vector<16x128xf32>
    %283 = arith.mulf %282, %282 : vector<16x128xf32>
    %cst_94 = arith.constant dense<0.000000e+00> : vector<16xf32>
    %284 = vector.multi_reduction <add>, %283, %cst_94 [1] : vector<16x128xf32> to vector<16xf32>
    %285 = vector.shape_cast %284 : vector<16xf32> to vector<16x1xf32>
    %cst_95 = arith.constant 1.280000e+02 : f32
    %286 = vector.broadcast %cst_95 : f32 to vector<16x1xf32>
    %287 = arith.divf %285, %286 : vector<16x1xf32>
    %288 = vector.broadcast %280 : vector<16x1xf32> to vector<16x128xf32>
    %289 = arith.subf %274, %288 : vector<16x128xf32>
    %cst_96 = arith.constant 9.99999974E-6 : f32
    %290 = vector.broadcast %cst_96 : f32 to vector<16x1xf32>
    %291 = arith.addf %287, %290 : vector<16x1xf32>
    %292 = math.rsqrt %291 : vector<16x1xf32>
    %293 = vector.broadcast %292 : vector<16x1xf32> to vector<16x128xf32>
    %294 = arith.mulf %289, %293 : vector<16x128xf32>
    %295 = vector.broadcast %275 : vector<1x128xf32> to vector<16x128xf32>
    %296 = arith.mulf %294, %295 : vector<16x128xf32>
    %297 = vector.broadcast %276 : vector<1x128xf32> to vector<16x128xf32>
    %298 = arith.addf %296, %297 : vector<16x128xf32>
    %c0_97 = arith.constant 0 : index
    %c0_98 = arith.constant 0 : index
    %299 = vector.load %arg14[%c0_97, %c0_98] : memref<16x128xf32, #tpu.memory_space<vmem>>, vector<16x128xf32>
    tpu.vector_store %arg14[%c0_97, %c0_98], %298 {strides = array<i32>} : memref<16x128xf32, #tpu.memory_space<vmem>>, vector<16x128xf32>,
    return
  }
}

</mosaic_0001>

<bundles_post_ra>
// kernel: tpu_custom_call.1
= control target key start
LH: loop header
LB: loop body
LE: loop exit
PB: predicated region body
PF: predicated region fallthrough
CT: control target
= control target key end

     0   :  { %19 = vsyncpa [#allocation3], 0  ;;  %s4480_s0 = inlined_call_operand.hbm [shape: f32[16,128], index: 0, kind: input, shape index: {}]   ;;  %s4481_s1 = inlined_call_operand.hbm [shape: f32[16,128], index: 1, kind: input, shape index: {}]   ;;  %s4482_s2 = inlined_call_operand.hbm [shape: bf16[128,384], index: 2, kind: input, shape index: {}]   ;;  %s4483_s3 = inlined_call_operand.vmem [shape: f32[1,384], index: 3, kind: input, shape index: {}]   ;;  %s4484_s4 = inlined_call_operand.hbm [shape: bf16[128,128], index: 4, kind: input, shape index: {}]   ;;  %s4485_s5 = inlined_call_operand.vmem [shape: f32[1,128], index: 5, kind: input, shape index: {}]   ;;  %s4486_s6 = inlined_call_operand.vmem [shape: f32[1,128], index: 6, kind: input, shape index: {}]   ;;  %s4487_s7 = inlined_call_operand.vmem [shape: f32[1,128], index: 7, kind: input, shape index: {}]   ;;  %s4488_s8 = inlined_call_operand.hbm [shape: bf16[128,128], index: 8, kind: input, shape index: {}]   ;;  %s4489_s9 = inlined_call_operand.vmem [shape: f32[1,128], index: 9, kind: input, shape index: {}]   ;;  %s4490_s10 = inlined_call_operand.hbm [shape: bf16[128,128], index: 10, kind: input, shape index: {}]   ;;  %s4491_s11 = inlined_call_operand.vmem [shape: f32[1,128], index: 11, kind: input, shape index: {}]   ;;  %s4492_s12 = inlined_call_operand.vmem [shape: f32[1,128], index: 12, kind: input, shape index: {}]   ;;  %s4493_s13 = inlined_call_operand.vmem [shape: f32[1,128], index: 13, kind: input, shape index: {}]   ;;  %s4494_s14 = inlined_call_operand.hbm [shape: f32[16,128], index: 14, kind: output, shape index: {}]  }
   0x1   :  { %20 = vsyncpa [#allocation6], 0 }
   0x2   :  { %21 = vsyncpa [#allocation9], 0 }
   0x3   :  { %22 = vsyncpa [#allocation12], 0 }
   0x4   :  { %23 = vsyncpa [#allocation4], 0  ;;  %s3797_s29 = smov [#allocation5]   ;;  %s3798_s15 = smov [#allocation8]  }
   0x5   :  { %s41_s30 = sshll.u32 %s3797_s29, 4  ;;  %s67_s16 = sshll.u32 %s3798_s15, 4  ;;  %s42_s30 = int_to_ptr.vmem [resolvable:$true] %s41_s30  ;;  %s3894_s16 = int_to_ptr.vmem [resolvable:$true] %s67_s16 }
   0x6   :  { %s3633_s19 = scalar_lea.hbm %s4481_s1, 256 }
   0x7   :  { %p3634_p0 = scmp.ne.s32.totalorder %s4481_s1, %s3633_s19  ;;  %p3637_p1 = scmp.lt.u32.totalorder %s3633_s19, %s4481_s1 }
   0x9   :  { %p3639_p2 = pnand %p3637_p1, %p3634_p0 }
   0xb   :  { %3642 = shalt.err (!%p3639_p2)
}
   0xc   :  { %s3643_s24 = scalar_lea.vmem %s42_s30, 256  ;;  %p3648_p4 = scmp.lt.s32.totalorder %s42_s30, %s42_s30 }
   0xd   :  { %p3644_p3 = scmp.ne.s32.totalorder %s42_s30, %s3643_s24  ;;  %p3649_p5 = scmp.lt.s32.totalorder %s3643_s24, %s3643_s24 }
   0xf   :  { %p3650_p6 = por %p3649_p5, %p3648_p4 }
  0x11   :  { %p3651_p7 = pnand %p3650_p6, %p3644_p3 }
  0x13   :  { %3654 = shalt.err (!%p3651_p7)
}
  0x14   :  { %s4495_s25 = smov 128   ;;  %s4497_s26 = smov 8  }
  0x15   :  { %47 = dma.hbm_to_vmem [thread:$0]  %s4481_s1, 256, %s42_s30, [#allocation6], %s4495_s25, %s4495_s25, %s4497_s26  }
  0x16   :  { %s3655_s17 = scalar_lea.hbm %s4484_s4, 1024 }
  0x17   :  { %p3656_p8 = scmp.ne.s32.totalorder %s4484_s4, %s3655_s17  ;;  %p3659_p9 = scmp.lt.u32.totalorder %s3655_s17, %s4484_s4 }
  0x19   :  { %p3661_p10 = pnand %p3659_p9, %p3656_p8 }
  0x1b   :  { %3664 = shalt.err (!%p3661_p10)
}
  0x1c   :  { %s3665_s22 = scalar_lea.vmem %s3894_s16, 1024  ;;  %p3670_p12 = scmp.lt.s32.totalorder %s3894_s16, %s3894_s16 }
  0x1d   :  { %p3666_p11 = scmp.ne.s32.totalorder %s3894_s16, %s3665_s22  ;;  %p3671_p13 = scmp.lt.s32.totalorder %s3665_s22, %s3665_s22 }
  0x1f   :  { %p3672_p0 = por %p3671_p13, %p3670_p12 }
  0x21   :  { %p3673_p1 = pnand %p3672_p0, %p3666_p11 }
  0x23   :  { %3676 = shalt.err (!%p3673_p1)
}
  0x24   :  { %s3801_s1 = smov 64   ;;  %s3802_s30 = smov 4  }
  0x25   :  { %73 = dma.hbm_to_vmem [thread:$0]  %s4484_s4, 1024, %s3894_s16, [#allocation9], %s3801_s1, %s3801_s1, %s3802_s30  }
  0x26   :  { %s3803_s27 = smov [#allocation2]   ;;  %s3804_s29 = smov [#allocation7]  }
  0x27   :  { %s29_s28 = sshll.u32 %s3803_s27, 4  ;;  %s53_s15 = sshll.u32 %s3804_s29, 4  ;;  %s30_s28 = int_to_ptr.vmem [resolvable:$true] %s29_s28  ;;  %s3931_s15 = int_to_ptr.vmem [resolvable:$true] %s53_s15 }
  0x28   :  { %s3677_s19 = scalar_lea.hbm %s4480_s0, 256 }
  0x29   :  { %p3678_p2 = scmp.ne.s32.totalorder %s4480_s0, %s3677_s19  ;;  %p3681_p3 = scmp.lt.u32.totalorder %s3677_s19, %s4480_s0 }
  0x2b   :  { %p3683_p4 = pnand %p3681_p3, %p3678_p2 }
  0x2d   :  { %3686 = shalt.err (!%p3683_p4)
}
  0x2e   :  { %s3687_s4 = scalar_lea.vmem %s30_s28, 256  ;;  %p3692_p6 = scmp.lt.s32.totalorder %s30_s28, %s30_s28 }
  0x2f   :  { %p3688_p5 = scmp.ne.s32.totalorder %s30_s28, %s3687_s4  ;;  %p3693_p7 = scmp.lt.s32.totalorder %s3687_s4, %s3687_s4 }
  0x31   :  { %p3694_p8 = por %p3693_p7, %p3692_p6 }
  0x33   :  { %p3695_p9 = pnand %p3694_p8, %p3688_p5 }
  0x35   :  { %3698 = shalt.err (!%p3695_p9)
}
  0x36   :  { %s4498_s16 = smov 128   ;;  %s3699_s25 = scalar_lea.hbm %s4482_s2, 3072 }
  0x37   :  { %35 = dma.hbm_to_vmem [thread:$0]  %s4480_s0, 256, %s30_s28, [#allocation3], %s4498_s16, %s4498_s16, %s4497_s26  }
  0x38   :  { %p3700_p10 = scmp.ne.s32.totalorder %s4482_s2, %s3699_s25  ;;  %p3703_p11 = scmp.lt.u32.totalorder %s3699_s25, %s4482_s2 }
  0x3a   :  { %p3705_p12 = pnand %p3703_p11, %p3700_p10 }
  0x3c   :  { %3708 = shalt.err (!%p3705_p12)
}
  0x3d   :  { %s3709_s21 = scalar_lea.vmem %s3931_s15, 3072  ;;  %p3714_p0 = scmp.lt.s32.totalorder %s3931_s15, %s3931_s15 }
  0x3e   :  { %p3710_p13 = scmp.ne.s32.totalorder %s3931_s15, %s3709_s21  ;;  %p3715_p1 = scmp.lt.s32.totalorder %s3709_s21, %s3709_s21 }
  0x40   :  { %p3716_p2 = por %p3715_p1, %p3714_p0 }
  0x42   :  { %p3717_p3 = pnand %p3716_p2, %p3710_p13 }
  0x44   :  { %3720 = shalt.err (!%p3717_p3)
}
  0x45   :  { %s3805_s0 = smov 192   ;;  %s3806_s28 = smov 12  }
  0x46   :  { %59 = dma.hbm_to_vmem [thread:$0]  %s4482_s2, 3072, %s3931_s15, [#allocation6], %s3805_s0, %s3805_s0, %s3806_s28  }
  0x47   :  { %s3807_s23 = smov [#allocation10]   ;;  %s3808_s27 = smov [#allocation11]  }
  0x48   :  { %s85_s24 = sshll.u32 %s3807_s23, 4  ;;  %s99_s29 = sshll.u32 %s3808_s27, 4  ;;  %s86_s24 = int_to_ptr.vmem [resolvable:$true] %s85_s24  ;;  %s3965_s29 = int_to_ptr.vmem [resolvable:$true] %s99_s29 }
  0x49   :  { %s3721_s18 = scalar_lea.hbm %s4488_s8, 1024 }
  0x4a   :  { %p3722_p4 = scmp.ne.s32.totalorder %s4488_s8, %s3721_s18  ;;  %p3725_p5 = scmp.lt.u32.totalorder %s3721_s18, %s4488_s8 }
  0x4c   :  { %p3727_p6 = pnand %p3725_p5, %p3722_p4 }
  0x4e   :  { %3730 = shalt.err (!%p3727_p6)
}
  0x4f   :  { %s3731_s2 = scalar_lea.vmem %s86_s24, 1024  ;;  %p3736_p8 = scmp.lt.s32.totalorder %s86_s24, %s86_s24 }
  0x50   :  { %p3732_p7 = scmp.ne.s32.totalorder %s86_s24, %s3731_s2  ;;  %p3737_p9 = scmp.lt.s32.totalorder %s3731_s2, %s3731_s2 }
  0x52   :  { %p3738_p10 = por %p3737_p9, %p3736_p8 }
  0x54   :  { %p3739_p11 = pnand %p3738_p10, %p3732_p7 }
  0x56   :  { %3742 = shalt.err (!%p3739_p11)
}
  0x57   :  { %91 = dma.hbm_to_vmem [thread:$0]  %s4488_s8, 1024, %s86_s24, [#allocation9], %s3801_s1, %s3801_s1, %s3802_s30  }
  0x58   :  { %s3743_s26 = scalar_lea.hbm %s4490_s10, 1024 }
  0x59   :  { %p3744_p12 = scmp.ne.s32.totalorder %s4490_s10, %s3743_s26  ;;  %p3747_p13 = scmp.lt.u32.totalorder %s3743_s26, %s4490_s10 }
  0x5b   :  { %p3749_p0 = pnand %p3747_p13, %p3744_p12 }
  0x5d   :  { %3752 = shalt.err (!%p3749_p0)
}
  0x5e   :  { %s3753_s17 = scalar_lea.vmem %s3965_s29, 1024  ;;  %p3758_p2 = scmp.lt.s32.totalorder %s3965_s29, %s3965_s29 }
  0x5f   :  { %p3754_p1 = scmp.ne.s32.totalorder %s3965_s29, %s3753_s17  ;;  %p3759_p3 = scmp.lt.s32.totalorder %s3753_s17, %s3753_s17 }
  0x61   :  { %p3760_p4 = por %p3759_p3, %p3758_p2 }
  0x63   :  { %p3761_p5 = pnand %p3760_p4, %p3754_p1 }
  0x65   :  { %3764 = shalt.err (!%p3761_p5)
}
  0x66   :  { %105 = dma.hbm_to_vmem [thread:$0]  %s4490_s10, 1024, %s3965_s29, [#allocation12], %s3801_s1, %s3801_s1, %s3802_s30  }
  0x67   :  { %3787 = dma.done.wait [#allocation3], 256  }
  0x68   :  { %3788 = vsyncadd [#allocation3], 4294967040 }
  0x69   :  { %3789 = dma.done.wait [#allocation6], 3328  }
  0x6a   :  { %3790 = vsyncadd [#allocation6], 4294963968 }
  0x6b   :  { %3791 = dma.done.wait [#allocation9], 2048  }
  0x6c   :  { %3792 = vsyncadd [#allocation9], 4294965248 }
  0x6d   :  { %3793 = dma.done.wait [#allocation12], 1024  }
  0x6e   :  { %3794 = vsyncadd [#allocation12], 4294966272  ;;  %v3809_v0 = vmov 0   ;;  %v3810_v1 = vmov 0.0   ;;  %v3505_v2 = vld [vmem:[#allocation7 + $0x4] ss:$12 sps:$4 sm:$0xff]   ;;  %v172_v33 = vlaneseq }
  0x6f   :  { %347 = vmatprep.mubr.bf16.mxu0 %v3809_v0  ;;  %3183 = vmatprep.subr.bf16.mxu1 %v3810_v1  ;;  %v3507_v3 = vld [vmem:[#allocation7] ss:$12 sps:$4 sm:$0xff]   ;;  %v3508_v4 = vld [vmem:[#allocation7 + $0x1c] ss:$12 sps:$4 sm:$0xff]   ;;  %v3510_v5 = vld [vmem:[#allocation7 + $0x18] ss:$12 sps:$4 sm:$0xff]  }
  0x70   :  { %315 = vmatprep.subr.bf16.mxu0 %v3505_v2  ;;  %v3511_v6 = vld [vmem:[#allocation7 + $0x34] ss:$12 sps:$4 sm:$0xff]   ;;  %v3513_v7 = vld [vmem:[#allocation7 + $0x30] ss:$12 sps:$4 sm:$0xff]   ;;  %v3514_v8 = vld [vmem:[#allocation7 + $0x4c] ss:$12 sps:$4 sm:$0xff]  }
  0x71   :  { %316 = vmatpush1.bf16.msra.mxu0 %v3507_v3  ;;  %v3516_v9 = vld [vmem:[#allocation7 + $0x48] ss:$12 sps:$4 sm:$0xff]   ;;  %v3517_v10 = vld [vmem:[#allocation7 + $0x64] ss:$12 sps:$4 sm:$0xff]   ;;  %v3530_v12 = vld [vmem:[#allocation7 + $0x20] ss:$12 sps:$4 sm:$0xff]  }
  0x72   :  { %317 = vmatprep.subr.bf16.mxu0 %v3508_v4  ;;  %v3529_v11 = vld [vmem:[#allocation7 + $0x8] ss:$12 sps:$4 sm:$0xff]   ;;  %v3519_v13 = vld [vmem:[#allocation7 + $0x60] ss:$12 sps:$4 sm:$0xff]   ;;  %v3522_v15 = vld [vmem:[#allocation7 + $0x78] ss:$12 sps:$4 sm:$0xff]  }
  0x73   :  { %3184 = vmatpush3.bf16.msra.mxu1 %v3529_v11  ;;  %v3520_v14 = vld [vmem:[#allocation7 + $0x7c] ss:$12 sps:$4 sm:$0xff]   ;;  %v3531_v16 = vld [vmem:[#allocation7 + $0x38] ss:$12 sps:$4 sm:$0xff]   ;;  %v3523_v17 = vld [vmem:[#allocation7 + $0x94] ss:$12 sps:$4 sm:$0xff]  }
  0x74   :  { %3185 = vmatprep.subr.bf16.mxu1 %v3810_v1  ;;  %v3532_v18 = vld [vmem:[#allocation7 + $0x50] ss:$12 sps:$4 sm:$0xff]   ;;  %v131_v20 = vld [vmem:[#allocation2] sm:$0xff]  ;;  %v132_v21 = vld [vmem:[#allocation2 + $0x8] sm:$0xff]  ;;  %vm3811_vm0 = vmmov 0   ;;  %v173_v34 = vshrl.u32 %v172_v33, 7 }
  0x75   :  { %318 = vmatpush1.bf16.msra.mxu0 %v3510_v5  ;;  %v3525_v19 = vld [vmem:[#allocation7 + $0x90] ss:$12 sps:$4 sm:$0xff]   ;;  %v3526_v24 = vld [vmem:[#allocation7 + $0xac] ss:$12 sps:$4 sm:$0xff]   ;;  %v3533_v25 = vld [vmem:[#allocation7 + $0x68] ss:$12 sps:$4 sm:$0xff]   ;;  %3199 = vmatprep.mubr.msk.bf16.mxu1 %vm3811_vm0, %v3810_v1 }
  0x76   :  { %319 = vmatprep.subr.bf16.mxu0 %v3511_v6  ;;  %v133_v22 = vld [vmem:[#allocation5] sm:$0xff]  ;;  %v134_v23 = vld [vmem:[#allocation5 + $0x8] sm:$0xff]  ;;  %v3534_v29 = vld [vmem:[#allocation7 + $0x80] ss:$12 sps:$4 sm:$0xff]   ;;  %v178_v35 = vsub.s32 1, %v173_v34  ;;  %v174_v38 = vsub.s32 0, %v173_v34 }
  0x77   :  { %3186 = vmatpush3.bf16.msra.mxu1 %v3530_v12  ;;  %v3528_v26 = vld [vmem:[#allocation7 + $0xa8] ss:$12 sps:$4 sm:$0xff]   ;;  %v4006_v27 = vmul.f32 %v133_v22, %v131_v20  ;;  %v4008_v28 = vmul.f32 %v134_v23, %v132_v21  ;;  %v3535_v31 = vld [vmem:[#allocation7 + $0x98] ss:$12 sps:$4 sm:$0xff]   ;;  %v3536_v32 = vld [vmem:[#allocation7 + $0xb0] ss:$12 sps:$4 sm:$0xff]  }
  0x78   :  { %3187 = vmatprep.subr.bf16.mxu1 %v3810_v1  ;;  %v170_v36 = vld [vmem:[%s4483_s3] sm:$0x7]  ;;  %vm426_vm1 = vcmask 130048   ;;  %s3812_s3 = smov 112   ;;  %v182_v54 = vsub.s32 2, %v173_v34  ;;  %vm553_vm2 = vcmask 1043456  }
  0x79   :  { %320 = vmatpush1.bf16.msra.mxu0 %v3513_v7  ;;  %v137_v30 = vpack.c.bf16 %v4008_v28, %v4006_v27  ;;  %v179_v37 = vrot.slane %v170_v36, %v178_v35  ;;  %v175_v44 = vrot.slane %v170_v36, %v174_v38  ;;  %v408_v3 = vand.u32 127, %v172_v33  ;;  %s3813_s29 = smov 96   ;;  %s3814_s18 = smov 80  }
  0x7a   :  { %321 = vmatprep.subr.bf16.mxu0 %v3514_v8  ;;  %v183_v55 = vrot.slane %v170_v36, %v182_v54  ;;  %vm525_vm4 = vcmask 64512   ;;  %s3815_s19 = smov 48   ;;  %s3817_s20 = smov 16  }
  0x7b   :  { %3188 = vmatpush3.bf16.msra.mxu1 %v3531_v16  ;;  %vm4061_vm3 = vcmp.gt.s32.totalorder %v408_v3, %v173_v34  ;;  %s3818_s27 = smov [#allocation13]  }
  0x7c   :  { %3189 = vmatprep.subr.bf16.mxu1 %v3810_v1  ;;  %s2966_s25 = sshll.u32 %s3818_s27, 4  ;;  %s2967_s25 = int_to_ptr.vmem [resolvable:$true] %s2966_s25 }
  0x7d   :  { %322 = vmatpush1.bf16.msra.mxu0 %v3516_v9  ;;  %s3765_s17 = scalar_lea.vmem %s2967_s25, 256  ;;  %p3770_p7 = scmp.lt.s32.totalorder %s2967_s25, %s2967_s25 }
  0x7e   :  { %323 = vmatprep.subr.bf16.mxu0 %v3517_v10  ;;  %p3766_p6 = scmp.ne.s32.totalorder %s2967_s25, %s3765_s17  ;;  %p3771_p8 = scmp.lt.s32.totalorder %s3765_s17, %s3765_s17 }
  0x7f   :  { %3190 = vmatpush3.bf16.msra.mxu1 %v3532_v18 }
  0x80   :  { %3191 = vmatprep.subr.bf16.mxu1 %v3810_v1  ;;  %p3772_p9 = por %p3771_p8, %p3770_p7 }
  0x81   :  { %324 = vmatpush1.bf16.msra.mxu0 %v3519_v13 }
  0x82   :  { %325 = vmatprep.subr.bf16.mxu0 %v3520_v14  ;;  %p3773_p10 = pnand %p3772_p9, %p3766_p6 }
  0x83   :  { %3192 = vmatpush3.bf16.msra.mxu1 %v3533_v25 }
  0x84   :  { %3193 = vmatprep.subr.bf16.mxu1 %v3810_v1 }
  0x85   :  { %326 = vmatpush1.bf16.msra.mxu0 %v3522_v15 }
  0x86   :  { %327 = vmatprep.subr.bf16.mxu0 %v3523_v17 }
  0x87   :  { %3194 = vmatpush3.bf16.msra.mxu1 %v3534_v29 }
  0x88   :  { %3195 = vmatprep.subr.bf16.mxu1 %v3810_v1 }
  0x89   :  { %328 = vmatpush1.bf16.msra.mxu0 %v3525_v19 }
  0x8a   :  { %329 = vmatprep.subr.bf16.mxu0 %v3526_v24 }
  0x8b   :  { %3196 = vmatpush3.bf16.msra.mxu1 %v3535_v31 }
  0x8c   :  { %3197 = vmatprep.subr.bf16.mxu1 %v3810_v1 }
  0x8d   :  { %330 = vmatpush1.bf16.msra.mxu0 %v3528_v26 }
  0x8e   :  { %3203 = vmatprep.subr.bf16.mxu0 %v3810_v1 }
  0x8f   :  { %3198 = vmatpush3.bf16.msra.mxu1 %v3536_v32 }
  0x90   :  { %348 = vmatmul.mubr.bf16.vlgmr.msra.gmra.mrb[0].mxu0 %v137_v30  ;;  %3209 = vmatprep.subr.bf16.mxu1 %v3810_v1 }
  0x91   :  { %3205 = vmatprep.mubr.msk.bf16.mxu0 %vm3811_vm0, %v3810_v1 }
  0x92   :  { %3200 = vmatmul.mubr.bf16.vlgmr.msra.gmra.mrb[0].mxu1 %v137_v30 }
  0x93   :  { %3211 = vmatprep.mubr.msk.bf16.mxu1 %vm3811_vm0, %v3810_v1 }
 0x163   :  { %v349_v39 = vpop.f32.mrb[0].mxu0 }
 0x164   :  { %v351_v40 = vpop.f32.mrb[1].mxu0  ;;  %v350_v49 = vadd.f32 %v349_v39, %v175_v44 }
 0x165   :  { %v352_v41 = vadd.f32 %v351_v40, %v179_v37  ;;  %v353_v42 = vpop.f32.mrb[2].mxu0  ;;  %v392_v56 = vpop.f32.mrb[0].mxu1 }
 0x166   :  { %v355_v43 = vpop.f32.mrb[3].mxu0  ;;  %v354_v51 = vadd.f32 %v353_v42, %v175_v44  ;;  %v4039_v52 = vpack.c.bf16 %v350_v49, %v350_v49  ;;  %v393_v57 = vadd.f32 %v392_v56, %v183_v55  ;;  %v3201_v58 = vpop.f32.mrb[1].mxu1 }
 0x167   :  { %v4027_v45 = vpack.c.bf16 %v352_v41, %v352_v41  ;;  %v356_v46 = vadd.f32 %v355_v43, %v179_v37  ;;  %v395_v59 = vpop.f32.mrb[2].mxu1 }
 0x168   :  { %v4041_v53 = vpack.c.bf16 %v354_v51, %v354_v51  ;;  %v396_v60 = vadd.f32 %v395_v59, %v183_v55  ;;  %v3202_v61 = vpop.f32.mrb[3].mxu1  ;;  %v4051_v62 = vpack.c.bf16 %v393_v57, %v393_v57 }
 0x169   :  { %v4029_v47 = vpack.c.bf16 %v356_v46, %v356_v46  ;;  %v431_v48 = vsel %vm426_vm1, %v4027_v45, 0 }
 0x16a   :  { %3204 = vmatpush3.bf16.xpose.msra.mxu0 %v431_v48  ;;  %v4053_v63 = vpack.c.bf16 %v396_v60, %v396_v60  ;;  %v555_v0 = vsel %vm553_vm2, %v4051_v62, 0 }
 0x16b   :  { %700 = vrot.lane.b32.xlu1 %v4029_v47, %s3812_s3  ;;  %v477_v50 = vsel %vm426_vm1, %v4029_v47, 0  ;;  %3215 = vmatprep.subr.bf16.mxu0 %v3810_v1 }
 0x16c   :  { %3210 = vmatpush3.bf16.xpose.msra.mxu1 %v477_v50  ;;  %v601_v2 = vsel %vm553_vm2, %v4053_v63, 0 }
 0x16d   :  { %3221 = vmatprep.subr.bf16.mxu1 %v3810_v1 }
 0x171   :  { %3206 = vmatmul.mubr.msk.bf16.vlgmr.msra.gmra.mrb[4].mxu0 %vm426_vm1, %v4039_v52 }
 0x172   :  { %3217 = vmatprep.mubr.msk.bf16.mxu0 %vm3811_vm0, %v3810_v1  ;;  %3216 = vmatpush3.bf16.msra.mxu0 %v555_v0 }
 0x173   :  { %3212 = vmatmul.mubr.msk.bf16.vlgmr.msra.gmra.mrb[4].mxu1 %vm426_vm1, %v4041_v53  ;;  %3227 = vmatprep.subr.bf16.mxu0 %v3810_v1 }
 0x174   :  { %3223 = vmatprep.mubr.msk.bf16.mxu1 %vm3811_vm0, %v3810_v1  ;;  %3222 = vmatpush3.bf16.msra.mxu1 %v601_v2 }
 0x175   :  { %3233 = vmatprep.subr.bf16.mxu1 %v3810_v1 }
 0x1dd   :  { %v701_v31 = vpop.permute.xlu1 %700 }
 0x1de   :  { %v706_v42 = vsel %vm426_vm1, %v701_v31, 0 }
 0x244   :  { %v467_v5 = vpop.f32.mrb[4].mxu0 }
 0x245   :  { %v519_v6 = vmul.f32 0.25, %v467_v5  ;;  %v3207_v7 = vpop.f32.mrb[5].mxu0 }
 0x246   :  { %v470_v8 = vpop.f32.mrb[6].mxu0  ;;  %v513_v9 = vpop.f32.mrb[4].mxu1 }
 0x247   :  { %v520_v10 = vmul.f32 0.25, %v513_v9  ;;  %v3208_v11 = vpop.f32.mrb[7].mxu0  ;;  %v3213_v12 = vpop.f32.mrb[5].mxu1  ;;  %v523_v13 = vsel %vm4061_vm3, -1e+30, %v519_v6 }
 0x248   :  { %v516_v14 = vpop.f32.mrb[6].mxu1  ;;  %v526_v15 = vsel %vm525_vm4, %v523_v13, -inf }
 0x249   :  { %v3214_v16 = vpop.f32.mrb[7].mxu1  ;;  %527 = vmax.xlane.f32.xlu0 %v526_v15  ;;  %v524_v17 = vsel %vm4061_vm3, -1e+30, %v520_v10 }
 0x24a   :  { %v529_v18 = vsel %vm525_vm4, %v524_v17, -inf }
 0x24d   :  { %530 = vmax.xlane.f32.xlu0 %v529_v18 }
 0x263   :  { %648 = vrot.lane.b32.xlu0 %v4027_v45, %s3812_s3 }
 0x2d6   :  { %v528_v19 = vpop.xlane.xlu0 %527 }
 0x2d7   :  { %v532_v20 = vsub.f32 %v523_v13, %v528_v19 }
 0x2d9   :  { %v534_v21 = vmul.f32 1.442695, %v532_v20 }
 0x2da   :  { %v531_v22 = vpop.xlane.xlu0 %530 }
 0x2db   :  { %3561 = vpow2.f32 %v534_v21  ;;  %v533_v23 = vsub.f32 %v524_v17, %v531_v22 }
 0x2dd   :  { %v536_v24 = vmul.f32 1.442695, %v533_v23 }
 0x2de   :  { %v649_v36 = vpop.permute.xlu0 %648 }
 0x2df   :  { %3563 = vpow2.f32 %v536_v24  ;;  %v654_v39 = vsel %vm426_vm1, %v649_v36, 0  ;;  %v3537_v36 = vld [vmem:[#allocation8] sm:$0xff]  }
 0x2e5   :  { %v3562_v25 = vpop.eup %3561 }
 0x2e6   :  { %v538_v26 = vsel %vm525_vm4, %v3562_v25, 0.0 }
 0x2e7   :  { %539 = vadd.xlane.f32.xlu1 %v538_v26 }
 0x2e9   :  { %v3564_v29 = vpop.eup %3563 }
 0x2ea   :  { %v541_v30 = vsel %vm525_vm4, %v3564_v29, 0.0 }
 0x2eb   :  { %542 = vadd.xlane.f32.xlu1 %v541_v30 }
 0x2fc   :  { %645 = vrot.lane.b32.xlu1 %v4039_v52, %s3812_s3 }
 0x300   :  { %697 = vrot.lane.b32.xlu1 %v4041_v53, %s3812_s3 }
 0x374   :  { %v540_v32 = vpop.xlane.xlu1 %539 }
 0x375   :  { %3565 = vrcp.f32 %v540_v32  ;;  %v3538_v32 = vld [vmem:[#allocation8 + $0x8] sm:$0xff]  }
 0x378   :  { %v543_v33 = vpop.xlane.xlu1 %542 }
 0x379   :  { %3567 = vrcp.f32 %v543_v33 }
 0x37c   :  { %v646_v43 = vpop.permute.xlu1 %645 }
 0x37f   :  { %v3566_v34 = vpop.eup %3565 }
 0x380   :  { %v545_v35 = vmul.f32 %v3566_v34, %v3562_v25  ;;  %v698_v44 = vpop.permute.xlu1 %697 }
 0x382   :  { %v548_v37 = vpack.c.bf16 %v545_v35, %v545_v35 }
 0x383   :  { %v3568_v38 = vpop.eup %3567 }
 0x384   :  { %v547_v40 = vmul.f32 %v3568_v38, %v3564_v29  ;;  %3218 = vmatmul.mubr.msk.bf16.vlgmr.msra.gmra.mrb[8].mxu0 %vm525_vm4, %v548_v37 }
 0x385   :  { %3228 = vmatpush3.bf16.xpose.msra.mxu0 %v654_v39  ;;  %3229 = vmatprep.mubr.msk.bf16.mxu0 %vm3811_vm0, %v3810_v1 }
 0x386   :  { %v549_v41 = vpack.c.bf16 %v547_v40, %v547_v40  ;;  %3239 = vmatprep.subr.bf16.mxu0 %v3810_v1 }
 0x388   :  { %3224 = vmatmul.mubr.msk.bf16.vlgmr.msra.gmra.mrb[8].mxu1 %vm525_vm4, %v549_v41 }
 0x389   :  { %3234 = vmatpush3.bf16.xpose.msra.mxu1 %v706_v42  ;;  %3235 = vmatprep.mubr.msk.bf16.mxu1 %vm3811_vm0, %v3810_v1 }
 0x38a   :  { %3245 = vmatprep.subr.bf16.mxu1 %v3810_v1 }
 0x38c   :  { %3230 = vmatmul.mubr.msk.bf16.vlgmr.msra.gmra.mrb[12].mxu0 %vm426_vm1, %v646_v43 }
 0x38d   :  { %3241 = vmatprep.mubr.msk.bf16.mxu0 %vm3811_vm0, %v3810_v1 }
 0x390   :  { %3236 = vmatmul.mubr.msk.bf16.vlgmr.msra.gmra.mrb[12].mxu1 %vm426_vm1, %v698_v44 }
 0x391   :  { %3247 = vmatprep.mubr.msk.bf16.mxu1 %vm3811_vm0, %v3810_v1 }
 0x457   :  { %v4095_v46 = vpop.f32.mrb[8].mxu0 }
 0x458   :  { %v3219_v48 = vpop.f32.mrb[9].mxu0 }
 0x459   :  { %v594_v49 = vpop.f32.mrb[10].mxu0 }
 0x45a   :  { %v3220_v50 = vpop.f32.mrb[11].mxu0 }
 0x45b   :  { %v4097_v51 = vpop.f32.mrb[8].mxu1 }
 0x45c   :  { %v643_v54 = vpack.c.bf16 %v4097_v51, %v4095_v46  ;;  %v3225_v55 = vpop.f32.mrb[9].mxu1 }
 0x45d   :  { %v640_v56 = vpop.f32.mrb[10].mxu1 }
 0x45e   :  { %v3226_v57 = vpop.f32.mrb[11].mxu1 }
 0x45f   :  { %v690_v58 = vpop.f32.mrb[12].mxu0 }
 0x460   :  { %v748_v59 = vmul.f32 0.25, %v690_v58  ;;  %v3231_v60 = vpop.f32.mrb[13].mxu0 }
 0x461   :  { %v693_v61 = vpop.f32.mrb[14].mxu0 }
 0x462   :  { %v3232_v0 = vpop.f32.mrb[15].mxu0  ;;  %v750_v2 = vsel %vm4061_vm3, -1e+30, %v748_v59 }
 0x463   :  { %v742_v3 = vpop.f32.mrb[12].mxu1  ;;  %v752_v5 = vsel %vm525_vm4, %v750_v2, -inf }
 0x464   :  { %v749_v6 = vmul.f32 0.25, %v742_v3  ;;  %v3237_v7 = vpop.f32.mrb[13].mxu1  ;;  %753 = vmax.xlane.f32.xlu0 %v752_v5 }
 0x465   :  { %v745_v8 = vpop.f32.mrb[14].mxu1 }
 0x466   :  { %v3238_v9 = vpop.f32.mrb[15].mxu1  ;;  %v751_v10 = vsel %vm4061_vm3, -1e+30, %v749_v6 }
 0x467   :  { %v755_v11 = vsel %vm525_vm4, %v751_v10, -inf }
 0x468   :  { %756 = vmax.xlane.f32.xlu1 %v755_v11 }
 0x479   :  { %826 = vrot.lane.b32.xlu1 %v4053_v63, %s3812_s3 }
 0x47d   :  { %977 = vrot.lane.b32.xlu1 %v4027_v45, %s3813_s29 }
 0x481   :  { %1027 = vrot.lane.b32.xlu1 %v4029_v47, %s3813_s29 }
 0x485   :  { %1025 = vrot.lane.b32.xlu1 %v4041_v53, %s3813_s29 }
 0x4f1   :  { %v754_v12 = vpop.xlane.xlu0 %753 }
 0x4f2   :  { %v758_v13 = vsub.f32 %v750_v2, %v754_v12 }
 0x4f4   :  { %v760_v14 = vmul.f32 1.442695, %v758_v13 }
 0x4f5   :  { %v757_v15 = vpop.xlane.xlu1 %756 }
 0x4f6   :  { %3569 = vpow2.f32 %v760_v14  ;;  %v759_v16 = vsub.f32 %v751_v10, %v757_v15 }
 0x4f8   :  { %v762_v17 = vmul.f32 1.442695, %v759_v16 }
 0x4f9   :  { %v827_v18 = vpop.permute.xlu1 %826 }
 0x4fa   :  { %3571 = vpow2.f32 %v762_v17  ;;  %v832_v19 = vsel %vm553_vm2, %v827_v18, 0 }
 0x4fb   :  { %3246 = vmatpush3.bf16.msra.mxu1 %v832_v19 }
 0x4fc   :  { %3257 = vmatprep.subr.bf16.mxu1 %v3810_v1 }
 0x4fd   :  { %v978_v38 = vpop.permute.xlu1 %977 }
 0x500   :  { %v3570_v20 = vpop.eup %3569 }
 0x501   :  { %v764_v21 = vsel %vm525_vm4, %v3570_v20, 0.0  ;;  %v1028_v39 = vpop.permute.xlu1 %1027 }
 0x502   :  { %765 = vadd.xlane.f32.xlu0 %v764_v21  ;;  %v1033_v40 = vsel %vm426_vm1, %v1028_v39, 0 }
 0x504   :  { %v3572_v22 = vpop.eup %3571 }
 0x505   :  { %v767_v23 = vsel %vm525_vm4, %v3572_v22, 0.0  ;;  %v1026_v41 = vpop.permute.xlu1 %1025 }
 0x506   :  { %768 = vadd.xlane.f32.xlu0 %v767_v23 }
 0x51c   :  { %777 = vrot.lane.b32.xlu0 %v4051_v62, %s3812_s3 }
 0x520   :  { %975 = vrot.lane.b32.xlu0 %v4039_v52, %s3813_s29 }
 0x58f   :  { %v766_v24 = vpop.xlane.xlu0 %765 }
 0x590   :  { %3573 = vrcp.f32 %v766_v24 }
 0x593   :  { %v769_v25 = vpop.xlane.xlu0 %768 }
 0x594   :  { %3575 = vrcp.f32 %v769_v25 }
 0x597   :  { %v778_v26 = vpop.permute.xlu0 %777 }
 0x598   :  { %v783_v29 = vsel %vm553_vm2, %v778_v26, 0 }
 0x599   :  { %3240 = vmatpush3.bf16.msra.mxu0 %v783_v29 }
 0x59a   :  { %v3574_v30 = vpop.eup %3573  ;;  %3251 = vmatprep.subr.bf16.mxu0 %v3810_v1 }
 0x59b   :  { %v771_v31 = vmul.f32 %v3574_v30, %v3570_v20  ;;  %v976_v58 = vpop.permute.xlu0 %975 }
 0x59d   :  { %v774_v33 = vpack.c.bf16 %v771_v31, %v771_v31 }
 0x59e   :  { %v3576_v34 = vpop.eup %3575 }
 0x59f   :  { %v773_v35 = vmul.f32 %v3576_v34, %v3572_v22  ;;  %3242 = vmatmul.mubr.msk.bf16.vlgmr.msra.gmra.mrb[16].mxu0 %vm525_vm4, %v774_v33 }
 0x5a0   :  { %3252 = vmatpush3.bf16.msra.mxu0 %v3538_v32  ;;  %3253 = vmatprep.mubr.msk.bf16.mxu0 %vm3811_vm0, %v3810_v1 }
 0x5a1   :  { %v775_v37 = vpack.c.bf16 %v773_v35, %v773_v35  ;;  %3263 = vmatprep.subr.bf16.mxu0 %v3810_v1 }
 0x5a3   :  { %3248 = vmatmul.mubr.msk.bf16.vlgmr.msra.gmra.mrb[16].mxu1 %vm525_vm4, %v775_v37 }
 0x5a4   :  { %3258 = vmatpush3.bf16.msra.mxu1 %v3537_v36  ;;  %3259 = vmatprep.mubr.msk.bf16.mxu1 %vm3811_vm0, %v3810_v1 }
 0x5a5   :  { %3269 = vmatprep.subr.bf16.mxu1 %v3810_v1 }
 0x5ab   :  { %3260 = vmatmul.mubr.msk.bf16.vlgmr.msra.gmra.mrb[20].mxu1 %vm426_vm1, %v643_v54  ;;  %v983_v54 = vsel %vm426_vm1, %v978_v38, 0 }
 0x5ac   :  { %3271 = vmatprep.mubr.msk.bf16.mxu1 %vm3811_vm0, %v3810_v1 }
 0x5ad   :  { %3270 = vmatpush3.bf16.xpose.msra.mxu1 %v1033_v40 }
 0x5ae   :  { %3281 = vmatprep.subr.bf16.mxu1 %v3810_v1 }
 0x5b4   :  { %3272 = vmatmul.mubr.msk.bf16.vlgmr.msra.gmra.mrb[24].mxu1 %vm426_vm1, %v1026_v41 }
 0x5b5   :  { %3283 = vmatprep.mubr.msk.bf16.mxu1 %vm3811_vm0, %v3810_v1 }
 0x672   :  { %v819_v42 = vpop.f32.mrb[16].mxu0 }
 0x673   :  { %v3243_v43 = vpop.f32.mrb[17].mxu0 }
 0x674   :  { %v822_v44 = vpop.f32.mrb[18].mxu0 }
 0x675   :  { %v3244_v46 = vpop.f32.mrb[19].mxu0 }
 0x676   :  { %v868_v48 = vpop.f32.mrb[16].mxu1 }
 0x677   :  { %v874_v49 = vpack.c.bf16 %v868_v48, %v819_v42  ;;  %v3249_v50 = vpop.f32.mrb[17].mxu1 }
 0x678   :  { %v871_v51 = vpop.f32.mrb[18].mxu1 }
 0x679   :  { %v3250_v55 = vpop.f32.mrb[19].mxu1  ;;  %3254 = vmatmul.mubr.msk.bf16.vlgmr.msra.gmra.mrb[20].mxu0 %vm426_vm1, %v874_v49 }
 0x67a   :  { %3264 = vmatpush3.bf16.xpose.msra.mxu0 %v983_v54  ;;  %3265 = vmatprep.mubr.msk.bf16.mxu0 %vm3811_vm0, %v3810_v1 }
 0x67b   :  { %3275 = vmatprep.subr.bf16.mxu0 %v3810_v1 }
 0x67e   :  { %v968_v56 = vpop.f32.mrb[20].mxu1 }
 0x67f   :  { %v3261_v57 = vpop.f32.mrb[21].mxu1 }
 0x680   :  { %v971_v59 = vpop.f32.mrb[22].mxu1 }
 0x681   :  { %v3262_v60 = vpop.f32.mrb[23].mxu1  ;;  %3266 = vmatmul.mubr.msk.bf16.vlgmr.msra.gmra.mrb[24].mxu0 %vm426_vm1, %v976_v58 }
 0x682   :  { %3277 = vmatprep.mubr.msk.bf16.mxu0 %vm3811_vm0, %v3810_v1 }
 0x687   :  { %v1069_v61 = vpop.f32.mrb[24].mxu1 }
 0x688   :  { %v1076_v0 = vmul.f32 0.25, %v1069_v61  ;;  %v3273_v2 = vpop.f32.mrb[25].mxu1 }
 0x689   :  { %v1072_v3 = vpop.f32.mrb[26].mxu1 }
 0x68a   :  { %v3274_v5 = vpop.f32.mrb[27].mxu1  ;;  %v1078_v6 = vsel %vm4061_vm3, -1e+30, %v1076_v0 }
 0x68b   :  { %v1082_v7 = vsel %vm525_vm4, %v1078_v6, -inf }
 0x68c   :  { %1083 = vmax.xlane.f32.xlu1 %v1082_v7 }
 0x69d   :  { %1151 = vrot.lane.b32.xlu1 %v4053_v63, %s3813_s29 }
 0x6a1   :  { %1254 = vrot.lane.b32.xlu1 %v4027_v45, %s3814_s18 }
 0x6a5   :  { %1304 = vrot.lane.b32.xlu1 %v4029_v47, %s3814_s18 }
 0x6a9   :  { %1302 = vrot.lane.b32.xlu1 %v4041_v53, %s3814_s18 }
 0x719   :  { %v1084_v8 = vpop.xlane.xlu1 %1083 }
 0x71a   :  { %v1086_v11 = vsub.f32 %v1078_v6, %v1084_v8 }
 0x71c   :  { %v1089_v12 = vmul.f32 1.442695, %v1086_v11 }
 0x71d   :  { %v1152_v9 = vpop.permute.xlu1 %1151 }
 0x71e   :  { %v1157_v10 = vsel %vm553_vm2, %v1152_v9, 0  ;;  %3577 = vpow2.f32 %v1089_v12 }
 0x71f   :  { %3282 = vmatpush3.bf16.msra.mxu1 %v1157_v10 }
 0x720   :  { %3293 = vmatprep.subr.bf16.mxu1 %v3810_v1 }
 0x721   :  { %v1255_v38 = vpop.permute.xlu1 %1254 }
 0x722   :  { %v1260_v40 = vsel %vm426_vm1, %v1255_v38, 0 }
 0x725   :  { %v1305_v3 = vpop.permute.xlu1 %1304 }
 0x726   :  { %v1310_v9 = vsel %vm426_vm1, %v1305_v3, 0 }
 0x728   :  { %v3578_v26 = vpop.eup %3577 }
 0x729   :  { %v1094_v29 = vsel %vm525_vm4, %v3578_v26, 0.0  ;;  %v1303_v11 = vpop.permute.xlu1 %1302 }
 0x74c   :  { %v918_v13 = vpop.f32.mrb[20].mxu0 }
 0x74d   :  { %v4165_v14 = vadd.f32 %v968_v56, %v918_v13  ;;  %v3255_v15 = vpop.f32.mrb[21].mxu0  ;;  %v3539_v56 = vld [vmem:[#allocation8 + $0x10] sm:$0xff]  }
 0x74e   :  { %v921_v16 = vpop.f32.mrb[22].mxu0 }
 0x74f   :  { %v4167_v17 = vadd.f32 %v971_v59, %v921_v16  ;;  %v3256_v18 = vpop.f32.mrb[23].mxu0 }
 0x754   :  { %v1019_v19 = vpop.f32.mrb[24].mxu0 }
 0x755   :  { %v1075_v20 = vmul.f32 0.25, %v1019_v19  ;;  %v3267_v21 = vpop.f32.mrb[25].mxu0 }
 0x756   :  { %v1022_v22 = vpop.f32.mrb[26].mxu0 }
 0x757   :  { %v3268_v23 = vpop.f32.mrb[27].mxu0  ;;  %v1077_v24 = vsel %vm4061_vm3, -1e+30, %v1075_v20 }
 0x758   :  { %v1079_v25 = vsel %vm525_vm4, %v1077_v24, -inf }
 0x759   :  { %1080 = vmax.xlane.f32.xlu0 %v1079_v25 }
 0x75d   :  { %1095 = vadd.xlane.f32.xlu0 %v1094_v29 }
 0x7e6   :  { %v1081_v30 = vpop.xlane.xlu0 %1080 }
 0x7e7   :  { %v1085_v31 = vsub.f32 %v1077_v24, %v1081_v30 }
 0x7e9   :  { %v1087_v32 = vmul.f32 1.442695, %v1085_v31 }
 0x7ea   :  { %v1096_v33 = vpop.xlane.xlu0 %1095 }
 0x7eb   :  { %3579 = vpow2.f32 %v1087_v32 }
 0x7ec   :  { %3581 = vrcp.f32 %v1096_v33 }
 0x7f5   :  { %v3580_v34 = vpop.eup %3579 }
 0x7f6   :  { %v3582_v35 = vpop.eup %3581  ;;  %v1091_v36 = vsel %vm525_vm4, %v3580_v34, 0.0 }
 0x7f7   :  { %v1100_v37 = vmul.f32 %v3582_v35, %v3578_v26  ;;  %1092 = vadd.xlane.f32.xlu0 %v1091_v36 }
 0x7f9   :  { %v1102_v39 = vpack.c.bf16 %v1100_v37, %v1100_v37 }
 0x7fb   :  { %3284 = vmatmul.mubr.msk.bf16.vlgmr.msra.gmra.mrb[28].mxu1 %vm525_vm4, %v1102_v39 }
 0x7fc   :  { %3294 = vmatpush3.bf16.xpose.msra.mxu1 %v1260_v40  ;;  %3295 = vmatprep.mubr.msk.bf16.mxu1 %vm3811_vm0, %v3810_v1 }
 0x7fd   :  { %3305 = vmatprep.subr.bf16.mxu1 %v3810_v1 }
 0x80d   :  { %1103 = vrot.lane.b32.xlu0 %v4051_v62, %s3813_s29 }
 0x811   :  { %1252 = vrot.lane.b32.xlu0 %v4039_v52, %s3814_s18 }
 0x884   :  { %v1093_v41 = vpop.xlane.xlu0 %1092 }
 0x885   :  { %3583 = vrcp.f32 %v1093_v41 }
 0x888   :  { %v1104_v42 = vpop.permute.xlu0 %1103 }
 0x889   :  { %v1109_v43 = vsel %vm553_vm2, %v1104_v42, 0 }
 0x88a   :  { %3276 = vmatpush3.bf16.msra.mxu0 %v1109_v43 }
 0x88b   :  { %3287 = vmatprep.subr.bf16.mxu0 %v3810_v1 }
 0x88c   :  { %v1253_v44 = vpop.permute.xlu0 %1252 }
 0x88d   :  { %3296 = vmatmul.mubr.msk.bf16.vlgmr.msra.gmra.mrb[32].mxu1 %vm426_vm1, %v1253_v44 }
 0x88e   :  { %3307 = vmatprep.mubr.msk.bf16.mxu1 %vm3811_vm0, %v3810_v1 }
 0x88f   :  { %v3584_v46 = vpop.eup %3583 }
 0x890   :  { %v1098_v48 = vmul.f32 %v3584_v46, %v3580_v34 }
 0x892   :  { %v1101_v49 = vpack.c.bf16 %v1098_v48, %v1098_v48 }
 0x894   :  { %3278 = vmatmul.mubr.msk.bf16.vlgmr.msra.gmra.mrb[28].mxu0 %vm525_vm4, %v1101_v49 }
 0x895   :  { %3289 = vmatprep.mubr.msk.bf16.mxu0 %vm3811_vm0, %v3810_v1  ;;  %3288 = vmatpush3.bf16.msra.mxu0 %v3539_v56  ;;  %v3540_v56 = vld [vmem:[#allocation8 + $0x18] sm:$0xff]  }
 0x896   :  { %3299 = vmatprep.subr.bf16.mxu0 %v3810_v1 }
 0x8ce   :  { %v1193_v50 = vpop.f32.mrb[28].mxu1 }
 0x8cf   :  { %v3285_v51 = vpop.f32.mrb[29].mxu1 }
 0x8d0   :  { %v1196_v54 = vpop.f32.mrb[30].mxu1 }
 0x8d1   :  { %v3286_v55 = vpop.f32.mrb[31].mxu1 }
 0x960   :  { %v1296_v57 = vpop.f32.mrb[32].mxu1 }
 0x961   :  { %v1352_v58 = vmul.f32 0.25, %v1296_v57  ;;  %v3297_v59 = vpop.f32.mrb[33].mxu1 }
 0x962   :  { %v1299_v60 = vpop.f32.mrb[34].mxu1 }
 0x963   :  { %v3298_v61 = vpop.f32.mrb[35].mxu1  ;;  %v1354_v0 = vsel %vm4061_vm3, -1e+30, %v1352_v58 }
 0x964   :  { %v1356_v2 = vsel %vm525_vm4, %v1354_v0, -inf }
 0x965   :  { %1357 = vmax.xlane.f32.xlu0 %v1356_v2 }
 0x967   :  { %v1145_v5 = vpop.f32.mrb[28].mxu0 }
 0x968   :  { %v1199_v6 = vpack.c.bf16 %v1193_v50, %v1145_v5  ;;  %v3279_v7 = vpop.f32.mrb[29].mxu0 }
 0x969   :  { %v1148_v8 = vpop.f32.mrb[30].mxu0 }
 0x96a   :  { %v3280_v10 = vpop.f32.mrb[31].mxu0  ;;  %3290 = vmatmul.mubr.msk.bf16.vlgmr.msra.gmra.mrb[32].mxu0 %vm426_vm1, %v1199_v6 }
 0x96b   :  { %3300 = vmatpush3.bf16.xpose.msra.mxu0 %v1310_v9  ;;  %3301 = vmatprep.mubr.msk.bf16.mxu0 %vm3811_vm0, %v3810_v1 }
 0x96c   :  { %3311 = vmatprep.subr.bf16.mxu0 %v3810_v1 }
 0x972   :  { %3302 = vmatmul.mubr.msk.bf16.vlgmr.msra.gmra.mrb[36].mxu0 %vm426_vm1, %v1303_v11 }
 0x973   :  { %3313 = vmatprep.mubr.msk.bf16.mxu0 %vm3811_vm0, %v3810_v1 }
 0x9f2   :  { %v1358_v12 = vpop.xlane.xlu0 %1357 }
 0x9f3   :  { %v1362_v13 = vsub.f32 %v1354_v0, %v1358_v12 }
 0x9f5   :  { %v1364_v15 = vmul.f32 1.442695, %v1362_v13 }
 0x9f7   :  { %3585 = vpow2.f32 %v1364_v15 }
 0xa01   :  { %v3586_v16 = vpop.eup %3585 }
 0xa02   :  { %v1368_v18 = vsel %vm525_vm4, %v3586_v16, 0.0 }
 0xa03   :  { %1369 = vadd.xlane.f32.xlu0 %v1368_v18 }
 0xa3d   :  { %v1243_v19 = vpop.f32.mrb[32].mxu0 }
 0xa3e   :  { %v4205_v20 = vadd.f32 %v1243_v19, %v4165_v14  ;;  %v3291_v21 = vpop.f32.mrb[33].mxu0 }
 0xa3f   :  { %v1246_v22 = vpop.f32.mrb[34].mxu0 }
 0xa40   :  { %v4208_v23 = vadd.f32 %v1246_v22, %v4167_v17  ;;  %v3292_v24 = vpop.f32.mrb[35].mxu0 }
 0xa45   :  { %v1346_v25 = vpop.f32.mrb[36].mxu0 }
 0xa46   :  { %v1353_v26 = vmul.f32 0.25, %v1346_v25  ;;  %v3303_v29 = vpop.f32.mrb[37].mxu0 }
 0xa47   :  { %v1349_v30 = vpop.f32.mrb[38].mxu0 }
 0xa48   :  { %v3304_v31 = vpop.f32.mrb[39].mxu0  ;;  %v1355_v32 = vsel %vm4061_vm3, -1e+30, %v1353_v26 }
 0xa49   :  { %v1359_v33 = vsel %vm525_vm4, %v1355_v32, -inf }
 0xa4a   :  { %1360 = vmax.xlane.f32.xlu1 %v1359_v33 }
 0xa5b   :  { %1428 = vrot.lane.b32.xlu1 %v4053_v63, %s3814_s18 }
 0xa5f   :  { %1531 = vrot.lane.b32.xlu1 %v4027_v45, %s3801_s1 }
 0xa63   :  { %1581 = vrot.lane.b32.xlu1 %v4029_v47, %s3801_s1 }
 0xa67   :  { %1579 = vrot.lane.b32.xlu1 %v4041_v53, %s3801_s1 }
 0xa90   :  { %v1370_v39 = vpop.xlane.xlu0 %1369 }
 0xad7   :  { %v1361_v14 = vpop.xlane.xlu1 %1360 }
 0xad8   :  { %v1363_v17 = vsub.f32 %v1355_v32, %v1361_v14 }
 0xada   :  { %v1366_v34 = vmul.f32 1.442695, %v1363_v17 }
 0xadb   :  { %v1429_v35 = vpop.permute.xlu1 %1428 }
 0xadc   :  { %3587 = vpow2.f32 %v1366_v34  ;;  %v1434_v36 = vsel %vm553_vm2, %v1429_v35, 0 }
 0xadd   :  { %3312 = vmatpush3.bf16.msra.mxu0 %v1434_v36  ;;  %3589 = vrcp.f32 %v1370_v39 }
 0xade   :  { %3323 = vmatprep.subr.bf16.mxu0 %v3810_v1 }
 0xadf   :  { %v1532_v50 = vpop.permute.xlu1 %1531 }
 0xae0   :  { %v1537_v54 = vsel %vm426_vm1, %v1532_v50, 0 }
 0xae3   :  { %v1582_v61 = vpop.permute.xlu1 %1581 }
 0xae4   :  { %v1587_v6 = vsel %vm426_vm1, %v1582_v61, 0 }
 0xae6   :  { %v3588_v37 = vpop.eup %3587 }
 0xae7   :  { %v1371_v38 = vsel %vm525_vm4, %v3588_v37, 0.0  ;;  %v3590_v40 = vpop.eup %3589  ;;  %v1580_v11 = vpop.permute.xlu1 %1579 }
 0xae8   :  { %1372 = vadd.xlane.f32.xlu0 %v1371_v38  ;;  %v1375_v42 = vmul.f32 %v3590_v40, %v3586_v16 }
 0xaea   :  { %v1378_v46 = vpack.c.bf16 %v1375_v42, %v1375_v42 }
 0xafe   :  { %1380 = vrot.lane.b32.xlu0 %v4051_v62, %s3814_s18 }
 0xb02   :  { %1529 = vrot.lane.b32.xlu0 %v4039_v52, %s3801_s1 }
 0xb75   :  { %v1373_v41 = vpop.xlane.xlu0 %1372 }
 0xb76   :  { %3591 = vrcp.f32 %v1373_v41 }
 0xb79   :  { %v1381_v43 = vpop.permute.xlu0 %1380 }
 0xb7a   :  { %v1386_v44 = vsel %vm553_vm2, %v1381_v43, 0 }
 0xb7b   :  { %3306 = vmatpush3.bf16.msra.mxu1 %v1386_v44 }
 0xb7c   :  { %3317 = vmatprep.subr.bf16.mxu1 %v3810_v1 }
 0xb7d   :  { %v1530_v55 = vpop.permute.xlu0 %1529 }
 0xb7e   :  { %3308 = vmatmul.mubr.msk.bf16.vlgmr.msra.gmra.mrb[36].mxu1 %vm525_vm4, %v1378_v46 }
 0xb7f   :  { %3319 = vmatprep.mubr.msk.bf16.mxu1 %vm3811_vm0, %v3810_v1  ;;  %3318 = vmatpush3.bf16.msra.mxu1 %v3540_v56 }
 0xb80   :  { %v3592_v48 = vpop.eup %3591  ;;  %3329 = vmatprep.subr.bf16.mxu1 %v3810_v1 }
 0xb81   :  { %v1377_v49 = vmul.f32 %v3592_v48, %v3588_v37 }
 0xb83   :  { %v1379_v51 = vpack.c.bf16 %v1377_v49, %v1377_v49 }
 0xb85   :  { %3314 = vmatmul.mubr.msk.bf16.vlgmr.msra.gmra.mrb[40].mxu0 %vm525_vm4, %v1379_v51 }
 0xb86   :  { %3324 = vmatpush3.bf16.xpose.msra.mxu0 %v1537_v54  ;;  %3325 = vmatprep.mubr.msk.bf16.mxu0 %vm3811_vm0, %v3810_v1 }
 0xb87   :  { %3335 = vmatprep.subr.bf16.mxu0 %v3810_v1 }
 0xb8d   :  { %3326 = vmatmul.mubr.msk.bf16.vlgmr.msra.gmra.mrb[44].mxu0 %vm426_vm1, %v1530_v55 }
 0xb8e   :  { %3337 = vmatprep.mubr.msk.bf16.mxu0 %vm3811_vm0, %v3810_v1 }
 0xc51   :  { %v1422_v57 = vpop.f32.mrb[36].mxu1 }
 0xc52   :  { %v3309_v58 = vpop.f32.mrb[37].mxu1 }
 0xc53   :  { %v1425_v59 = vpop.f32.mrb[38].mxu1 }
 0xc54   :  { %v3310_v60 = vpop.f32.mrb[39].mxu1 }
 0xc55   :  { %v3541_v60 = vld [vmem:[#allocation8 + $0x20] sm:$0xff]  }
 0xc58   :  { %v1470_v0 = vpop.f32.mrb[40].mxu0 }
 0xc59   :  { %v1476_v2 = vpack.c.bf16 %v1470_v0, %v1422_v57  ;;  %v3315_v3 = vpop.f32.mrb[41].mxu0 }
 0xc5a   :  { %v1473_v5 = vpop.f32.mrb[42].mxu0 }
 0xc5b   :  { %v3316_v7 = vpop.f32.mrb[43].mxu0  ;;  %3320 = vmatmul.mubr.msk.bf16.vlgmr.msra.gmra.mrb[40].mxu1 %vm426_vm1, %v1476_v2 }
 0xc5c   :  { %3330 = vmatpush3.bf16.xpose.msra.mxu1 %v1587_v6  ;;  %3331 = vmatprep.mubr.msk.bf16.mxu1 %vm3811_vm0, %v3810_v1 }
 0xc5d   :  { %3341 = vmatprep.subr.bf16.mxu1 %v3810_v1 }
 0xc60   :  { %v1573_v8 = vpop.f32.mrb[44].mxu0 }
 0xc61   :  { %v1629_v9 = vmul.f32 0.25, %v1573_v8  ;;  %v3327_v10 = vpop.f32.mrb[45].mxu0 }
 0xc62   :  { %v1576_v12 = vpop.f32.mrb[46].mxu0 }
 0xc63   :  { %v3328_v13 = vpop.f32.mrb[47].mxu0  ;;  %3332 = vmatmul.mubr.msk.bf16.vlgmr.msra.gmra.mrb[44].mxu1 %vm426_vm1, %v1580_v11  ;;  %v1631_v15 = vsel %vm4061_vm3, -1e+30, %v1629_v9 }
 0xc64   :  { %v1633_v16 = vsel %vm525_vm4, %v1631_v15, -inf  ;;  %3343 = vmatprep.mubr.msk.bf16.mxu1 %vm3811_vm0, %v3810_v1 }
 0xc65   :  { %1634 = vmax.xlane.f32.xlu0 %v1633_v16 }
 0xcf2   :  { %v1635_v18 = vpop.xlane.xlu0 %1634 }
 0xcf3   :  { %v1639_v19 = vsub.f32 %v1631_v15, %v1635_v18 }
 0xcf5   :  { %v1641_v21 = vmul.f32 1.442695, %v1639_v19 }
 0xcf7   :  { %3593 = vpow2.f32 %v1641_v21 }
 0xd01   :  { %v3594_v22 = vpop.eup %3593 }
 0xd02   :  { %v1645_v24 = vsel %vm525_vm4, %v3594_v22, 0.0 }
 0xd03   :  { %1646 = vadd.xlane.f32.xlu0 %v1645_v24 }
 0xd2e   :  { %v1520_v25 = vpop.f32.mrb[40].mxu1 }
 0xd2f   :  { %v4255_v26 = vadd.f32 %v1520_v25, %v4205_v20  ;;  %v3321_v29 = vpop.f32.mrb[41].mxu1 }
 0xd30   :  { %v1523_v30 = vpop.f32.mrb[42].mxu1 }
 0xd31   :  { %v4258_v31 = vadd.f32 %v1523_v30, %v4208_v23  ;;  %v3322_v32 = vpop.f32.mrb[43].mxu1 }
 0xd36   :  { %v1623_v33 = vpop.f32.mrb[44].mxu1 }
 0xd37   :  { %v1630_v14 = vmul.f32 0.25, %v1623_v33  ;;  %v3333_v17 = vpop.f32.mrb[45].mxu1 }
 0xd38   :  { %v1626_v34 = vpop.f32.mrb[46].mxu1 }
 0xd39   :  { %v3334_v35 = vpop.f32.mrb[47].mxu1  ;;  %v1632_v36 = vsel %vm4061_vm3, -1e+30, %v1630_v14 }
 0xd3a   :  { %v1636_v37 = vsel %vm525_vm4, %v1632_v36, -inf }
 0xd3b   :  { %1637 = vmax.xlane.f32.xlu1 %v1636_v37 }
 0xd4c   :  { %1705 = vrot.lane.b32.xlu1 %v4053_v63, %s3801_s1 }
 0xd50   :  { %1808 = vrot.lane.b32.xlu1 %v4027_v45, %s3815_s19 }
 0xd54   :  { %1858 = vrot.lane.b32.xlu1 %v4029_v47, %s3815_s19 }
 0xd58   :  { %1856 = vrot.lane.b32.xlu1 %v4041_v53, %s3815_s19 }
 0xd90   :  { %v1647_v43 = vpop.xlane.xlu0 %1646 }
 0xdc8   :  { %v1638_v20 = vpop.xlane.xlu1 %1637 }
 0xdc9   :  { %v1640_v23 = vsub.f32 %v1632_v36, %v1638_v20 }
 0xdcb   :  { %v1643_v38 = vmul.f32 1.442695, %v1640_v23 }
 0xdcc   :  { %v1706_v39 = vpop.permute.xlu1 %1705 }
 0xdcd   :  { %3595 = vpow2.f32 %v1643_v38  ;;  %v1711_v40 = vsel %vm553_vm2, %v1706_v39, 0 }
 0xdce   :  { %3342 = vmatpush3.bf16.msra.mxu1 %v1711_v40  ;;  %3597 = vrcp.f32 %v1647_v43 }
 0xdcf   :  { %3353 = vmatprep.subr.bf16.mxu1 %v3810_v1 }
 0xdd0   :  { %v1809_v56 = vpop.permute.xlu1 %1808 }
 0xdd1   :  { %v1814_v58 = vsel %vm426_vm1, %v1809_v56, 0 }
 0xdd4   :  { %v1859_v5 = vpop.permute.xlu1 %1858 }
 0xdd5   :  { %v1864_v10 = vsel %vm426_vm1, %v1859_v5, 0 }
 0xdd7   :  { %v3596_v41 = vpop.eup %3595 }
 0xdd8   :  { %v1648_v42 = vsel %vm525_vm4, %v3596_v41, 0.0  ;;  %v3598_v44 = vpop.eup %3597  ;;  %v1857_v16 = vpop.permute.xlu1 %1856 }
 0xdd9   :  { %1649 = vadd.xlane.f32.xlu0 %v1648_v42  ;;  %v1652_v48 = vmul.f32 %v3598_v44, %v3594_v22 }
 0xddb   :  { %v1655_v51 = vpack.c.bf16 %v1652_v48, %v1652_v48 }
 0xdef   :  { %1657 = vrot.lane.b32.xlu0 %v4051_v62, %s3801_s1  ;;  %s3816_s1 = smov 32  }
 0xdf3   :  { %1806 = vrot.lane.b32.xlu0 %v4039_v52, %s3815_s19 }
 0xe66   :  { %v1650_v46 = vpop.xlane.xlu0 %1649 }
 0xe67   :  { %3599 = vrcp.f32 %v1650_v46 }
 0xe6a   :  { %v1658_v49 = vpop.permute.xlu0 %1657 }
 0xe6b   :  { %v1663_v50 = vsel %vm553_vm2, %v1658_v49, 0 }
 0xe6c   :  { %3336 = vmatpush3.bf16.msra.mxu0 %v1663_v50 }
 0xe6d   :  { %3347 = vmatprep.subr.bf16.mxu0 %v3810_v1 }
 0xe6e   :  { %v1807_v59 = vpop.permute.xlu0 %1806 }
 0xe6f   :  { %3338 = vmatmul.mubr.msk.bf16.vlgmr.msra.gmra.mrb[48].mxu0 %vm525_vm4, %v1655_v51 }
 0xe70   :  { %3349 = vmatprep.mubr.msk.bf16.mxu0 %vm3811_vm0, %v3810_v1  ;;  %3348 = vmatpush3.bf16.msra.mxu0 %v3541_v60 }
 0xe71   :  { %v3600_v54 = vpop.eup %3599  ;;  %3359 = vmatprep.subr.bf16.mxu0 %v3810_v1 }
 0xe72   :  { %v1654_v55 = vmul.f32 %v3600_v54, %v3596_v41 }
 0xe74   :  { %v1656_v57 = vpack.c.bf16 %v1654_v55, %v1654_v55 }
 0xe76   :  { %3344 = vmatmul.mubr.msk.bf16.vlgmr.msra.gmra.mrb[48].mxu1 %vm525_vm4, %v1656_v57 }
 0xe77   :  { %3354 = vmatpush3.bf16.xpose.msra.mxu1 %v1814_v58  ;;  %3355 = vmatprep.mubr.msk.bf16.mxu1 %vm3811_vm0, %v3810_v1 }
 0xe78   :  { %3365 = vmatprep.subr.bf16.mxu1 %v3810_v1 }
 0xe7e   :  { %3356 = vmatmul.mubr.msk.bf16.vlgmr.msra.gmra.mrb[52].mxu1 %vm426_vm1, %v1807_v59 }
 0xe7f   :  { %3367 = vmatprep.mubr.msk.bf16.mxu1 %vm3811_vm0, %v3810_v1 }
 0xf42   :  { %v1699_v61 = vpop.f32.mrb[48].mxu0 }
 0xf43   :  { %v3339_v0 = vpop.f32.mrb[49].mxu0 }
 0xf44   :  { %v1702_v2 = vpop.f32.mrb[50].mxu0 }
 0xf45   :  { %v3340_v3 = vpop.f32.mrb[51].mxu0 }
 0xf46   :  { %v3542_v3 = vld [vmem:[#allocation8 + $0x28] sm:$0xff]  }
 0xf49   :  { %v1747_v6 = vpop.f32.mrb[48].mxu1 }
 0xf4a   :  { %v1753_v7 = vpack.c.bf16 %v1747_v6, %v1699_v61  ;;  %v3345_v8 = vpop.f32.mrb[49].mxu1 }
 0xf4b   :  { %v1750_v9 = vpop.f32.mrb[50].mxu1 }
 0xf4c   :  { %v3346_v11 = vpop.f32.mrb[51].mxu1  ;;  %3350 = vmatmul.mubr.msk.bf16.vlgmr.msra.gmra.mrb[52].mxu0 %vm426_vm1, %v1753_v7 }
 0xf4d   :  { %3360 = vmatpush3.bf16.xpose.msra.mxu0 %v1864_v10  ;;  %3361 = vmatprep.mubr.msk.bf16.mxu0 %vm3811_vm0, %v3810_v1 }
 0xf4e   :  { %3371 = vmatprep.subr.bf16.mxu0 %v3810_v1 }
 0xf51   :  { %v1850_v12 = vpop.f32.mrb[52].mxu1 }
 0xf52   :  { %v1906_v13 = vmul.f32 0.25, %v1850_v12  ;;  %v3357_v15 = vpop.f32.mrb[53].mxu1 }
 0xf53   :  { %v1853_v18 = vpop.f32.mrb[54].mxu1 }
 0xf54   :  { %v3358_v19 = vpop.f32.mrb[55].mxu1  ;;  %3362 = vmatmul.mubr.msk.bf16.vlgmr.msra.gmra.mrb[56].mxu0 %vm426_vm1, %v1857_v16  ;;  %v1908_v21 = vsel %vm4061_vm3, -1e+30, %v1906_v13 }
 0xf55   :  { %v1910_v22 = vsel %vm525_vm4, %v1908_v21, -inf  ;;  %3373 = vmatprep.mubr.msk.bf16.mxu0 %vm3811_vm0, %v3810_v1 }
 0xf56   :  { %1911 = vmax.xlane.f32.xlu0 %v1910_v22 }
 0xfe3   :  { %v1912_v24 = vpop.xlane.xlu0 %1911 }
 0xfe4   :  { %v1916_v25 = vsub.f32 %v1908_v21, %v1912_v24 }
 0xfe6   :  { %v1918_v29 = vmul.f32 1.442695, %v1916_v25 }
 0xfe8   :  { %3601 = vpow2.f32 %v1918_v29 }
 0xff2   :  { %v3602_v30 = vpop.eup %3601 }
 0xff3   :  { %v1922_v32 = vsel %vm525_vm4, %v3602_v30, 0.0 }
 0xff4   :  { %1923 = vadd.xlane.f32.xlu0 %v1922_v32 }
0x101f   :  { %v1797_v33 = vpop.f32.mrb[52].mxu0 }
0x1020   :  { %v4305_v14 = vadd.f32 %v1797_v33, %v4255_v26  ;;  %v3351_v17 = vpop.f32.mrb[53].mxu0 }
0x1021   :  { %v1800_v34 = vpop.f32.mrb[54].mxu0 }
0x1022   :  { %v4308_v35 = vadd.f32 %v1800_v34, %v4258_v31  ;;  %v3352_v36 = vpop.f32.mrb[55].mxu0 }
0x1027   :  { %v1900_v37 = vpop.f32.mrb[56].mxu0 }
0x1028   :  { %v1907_v20 = vmul.f32 0.25, %v1900_v37  ;;  %v3363_v23 = vpop.f32.mrb[57].mxu0 }
0x1029   :  { %v1903_v38 = vpop.f32.mrb[58].mxu0 }
0x102a   :  { %v3364_v39 = vpop.f32.mrb[59].mxu0  ;;  %v1909_v40 = vsel %vm4061_vm3, -1e+30, %v1907_v20 }
0x102b   :  { %v1913_v41 = vsel %vm525_vm4, %v1909_v40, -inf }
0x102c   :  { %1914 = vmax.xlane.f32.xlu1 %v1913_v41 }
0x103d   :  { %1982 = vrot.lane.b32.xlu1 %v4053_v63, %s3815_s19 }
0x1041   :  { %2085 = vrot.lane.b32.xlu1 %v4027_v45, %s3816_s1 }
0x1045   :  { %2135 = vrot.lane.b32.xlu1 %v4029_v47, %s3816_s1 }
0x1049   :  { %2133 = vrot.lane.b32.xlu1 %v4041_v53, %s3816_s1 }
0x1081   :  { %v1924_v49 = vpop.xlane.xlu0 %1923 }
0x10b9   :  { %v1915_v26 = vpop.xlane.xlu1 %1914 }
0x10ba   :  { %v1917_v31 = vsub.f32 %v1909_v40, %v1915_v26 }
0x10bc   :  { %v1920_v42 = vmul.f32 1.442695, %v1917_v31 }
0x10bd   :  { %v1983_v43 = vpop.permute.xlu1 %1982 }
0x10be   :  { %3603 = vpow2.f32 %v1920_v42  ;;  %v1988_v44 = vsel %vm553_vm2, %v1983_v43, 0 }
0x10bf   :  { %3372 = vmatpush3.bf16.msra.mxu0 %v1988_v44  ;;  %3605 = vrcp.f32 %v1924_v49 }
0x10c0   :  { %3383 = vmatprep.subr.bf16.mxu0 %v3810_v1 }
0x10c1   :  { %v2086_v60 = vpop.permute.xlu1 %2085 }
0x10c2   :  { %v2091_v0 = vsel %vm426_vm1, %v2086_v60, 0 }
0x10c5   :  { %v2136_v9 = vpop.permute.xlu1 %2135 }
0x10c6   :  { %v2141_v15 = vsel %vm426_vm1, %v2136_v9, 0 }
0x10c8   :  { %v3604_v46 = vpop.eup %3603 }
0x10c9   :  { %v1925_v48 = vsel %vm525_vm4, %v3604_v46, 0.0  ;;  %v3606_v50 = vpop.eup %3605  ;;  %v2134_v22 = vpop.permute.xlu1 %2133 }
0x10ca   :  { %1926 = vadd.xlane.f32.xlu0 %v1925_v48  ;;  %v1929_v54 = vmul.f32 %v3606_v50, %v3602_v30 }
0x10cc   :  { %v1932_v57 = vpack.c.bf16 %v1929_v54, %v1929_v54 }
0x10e0   :  { %1934 = vrot.lane.b32.xlu0 %v4051_v62, %s3815_s19 }
0x10e4   :  { %2083 = vrot.lane.b32.xlu0 %v4039_v52, %s3816_s1 }
0x1157   :  { %v1927_v51 = vpop.xlane.xlu0 %1926 }
0x1158   :  { %3607 = vrcp.f32 %v1927_v51 }
0x115b   :  { %v1935_v55 = vpop.permute.xlu0 %1934 }
0x115c   :  { %v1940_v56 = vsel %vm553_vm2, %v1935_v55, 0 }
0x115d   :  { %3366 = vmatpush3.bf16.msra.mxu1 %v1940_v56 }
0x115e   :  { %3377 = vmatprep.subr.bf16.mxu1 %v3810_v1 }
0x115f   :  { %v2084_v2 = vpop.permute.xlu0 %2083 }
0x1160   :  { %3368 = vmatmul.mubr.msk.bf16.vlgmr.msra.gmra.mrb[56].mxu1 %vm525_vm4, %v1932_v57 }
0x1161   :  { %3379 = vmatprep.mubr.msk.bf16.mxu1 %vm3811_vm0, %v3810_v1  ;;  %3378 = vmatpush3.bf16.msra.mxu1 %v3542_v3  ;;  %v3543_v3 = vld [vmem:[#allocation8 + $0x30] sm:$0xff]  }
0x1162   :  { %v3608_v58 = vpop.eup %3607  ;;  %3389 = vmatprep.subr.bf16.mxu1 %v3810_v1 }
0x1163   :  { %v1931_v59 = vmul.f32 %v3608_v58, %v3604_v46 }
0x1165   :  { %v1933_v61 = vpack.c.bf16 %v1931_v59, %v1931_v59 }
0x1167   :  { %3374 = vmatmul.mubr.msk.bf16.vlgmr.msra.gmra.mrb[60].mxu0 %vm525_vm4, %v1933_v61 }
0x1168   :  { %3384 = vmatpush3.bf16.xpose.msra.mxu0 %v2091_v0  ;;  %3385 = vmatprep.mubr.msk.bf16.mxu0 %vm3811_vm0, %v3810_v1 }
0x1169   :  { %3395 = vmatprep.subr.bf16.mxu0 %v3810_v1 }
0x116f   :  { %3386 = vmatmul.mubr.msk.bf16.vlgmr.msra.gmra.mrb[64].mxu0 %vm426_vm1, %v2084_v2 }
0x1170   :  { %3397 = vmatprep.mubr.msk.bf16.mxu0 %vm3811_vm0, %v3810_v1 }
0x1233   :  { %v1976_v5 = vpop.f32.mrb[56].mxu1 }
0x1234   :  { %v3369_v6 = vpop.f32.mrb[57].mxu1 }
0x1235   :  { %v1979_v7 = vpop.f32.mrb[58].mxu1 }
0x1236   :  { %v3370_v8 = vpop.f32.mrb[59].mxu1 }
0x123a   :  { %v2024_v10 = vpop.f32.mrb[60].mxu0 }
0x123b   :  { %v2030_v11 = vpack.c.bf16 %v2024_v10, %v1976_v5  ;;  %v3375_v12 = vpop.f32.mrb[61].mxu0 }
0x123c   :  { %v2027_v13 = vpop.f32.mrb[62].mxu0 }
0x123d   :  { %v3376_v16 = vpop.f32.mrb[63].mxu0  ;;  %3380 = vmatmul.mubr.msk.bf16.vlgmr.msra.gmra.mrb[60].mxu1 %vm426_vm1, %v2030_v11 }
0x123e   :  { %3390 = vmatpush3.bf16.xpose.msra.mxu1 %v2141_v15  ;;  %3391 = vmatprep.mubr.msk.bf16.mxu1 %vm3811_vm0, %v3810_v1 }
0x123f   :  { %3401 = vmatprep.subr.bf16.mxu1 %v3810_v1 }
0x1242   :  { %v2127_v18 = vpop.f32.mrb[64].mxu0 }
0x1243   :  { %v2183_v19 = vmul.f32 0.25, %v2127_v18  ;;  %v3387_v21 = vpop.f32.mrb[65].mxu0 }
0x1244   :  { %v2130_v24 = vpop.f32.mrb[66].mxu0 }
0x1245   :  { %v3388_v25 = vpop.f32.mrb[67].mxu0  ;;  %3392 = vmatmul.mubr.msk.bf16.vlgmr.msra.gmra.mrb[64].mxu1 %vm426_vm1, %v2134_v22  ;;  %v2185_v29 = vsel %vm4061_vm3, -1e+30, %v2183_v19 }
0x1246   :  { %v2187_v30 = vsel %vm525_vm4, %v2185_v29, -inf  ;;  %3403 = vmatprep.mubr.msk.bf16.mxu1 %vm3811_vm0, %v3810_v1 }
0x1247   :  { %2188 = vmax.xlane.f32.xlu0 %v2187_v30 }
0x12d4   :  { %v2189_v32 = vpop.xlane.xlu0 %2188 }
0x12d5   :  { %v2193_v33 = vsub.f32 %v2185_v29, %v2189_v32 }
0x12d7   :  { %v2195_v17 = vmul.f32 1.442695, %v2193_v33 }
0x12d9   :  { %3609 = vpow2.f32 %v2195_v17 }
0x12e3   :  { %v3610_v34 = vpop.eup %3609 }
0x12e4   :  { %v2199_v36 = vsel %vm525_vm4, %v3610_v34, 0.0 }
0x12e5   :  { %2200 = vadd.xlane.f32.xlu0 %v2199_v36 }
0x1310   :  { %v2074_v37 = vpop.f32.mrb[60].mxu1 }
0x1311   :  { %v4355_v20 = vadd.f32 %v2074_v37, %v4305_v14  ;;  %v3381_v23 = vpop.f32.mrb[61].mxu1 }
0x1312   :  { %v2077_v38 = vpop.f32.mrb[62].mxu1 }
0x1313   :  { %v4358_v39 = vadd.f32 %v2077_v38, %v4308_v35  ;;  %v3382_v40 = vpop.f32.mrb[63].mxu1 }
0x1318   :  { %v2177_v41 = vpop.f32.mrb[64].mxu1 }
0x1319   :  { %v2184_v26 = vmul.f32 0.25, %v2177_v41  ;;  %v3393_v31 = vpop.f32.mrb[65].mxu1 }
0x131a   :  { %v2180_v42 = vpop.f32.mrb[66].mxu1 }
0x131b   :  { %v3394_v43 = vpop.f32.mrb[67].mxu1  ;;  %v2186_v44 = vsel %vm4061_vm3, -1e+30, %v2184_v26 }
0x131c   :  { %v2190_v46 = vsel %vm525_vm4, %v2186_v44, -inf }
0x131d   :  { %2191 = vmax.xlane.f32.xlu1 %v2190_v46 }
0x132e   :  { %2259 = vrot.lane.b32.xlu1 %v4053_v63, %s3816_s1 }
0x1332   :  { %2362 = vrot.lane.b32.xlu1 %v4027_v45, %s3817_s20 }
0x1336   :  { %2412 = vrot.lane.b32.xlu1 %v4029_v47, %s3817_s20 }
0x133a   :  { %2410 = vrot.lane.b32.xlu1 %v4041_v53, %s3817_s20 }
0x1372   :  { %v2201_v45 = vpop.xlane.xlu0 %2200 }
0x13aa   :  { %v2192_v14 = vpop.xlane.xlu1 %2191 }
0x13ab   :  { %v2194_v35 = vsub.f32 %v2186_v44, %v2192_v14 }
0x13ad   :  { %v2197_v48 = vmul.f32 1.442695, %v2194_v35 }
0x13ae   :  { %v2260_v49 = vpop.permute.xlu1 %2259 }
0x13af   :  { %3611 = vpow2.f32 %v2197_v48  ;;  %v2265_v50 = vsel %vm553_vm2, %v2260_v49, 0 }
0x13b0   :  { %3402 = vmatpush3.bf16.msra.mxu1 %v2265_v50  ;;  %3613 = vrcp.f32 %v2201_v45 }
0x13b1   :  { %3413 = vmatprep.subr.bf16.mxu1 %v3810_v1 }
0x13b2   :  { %v2363_v60 = vpop.permute.xlu1 %2362 }
0x13b3   :  { %v2368_v0 = vsel %vm426_vm1, %v2363_v60, 0 }
0x13b6   :  { %v2413_v9 = vpop.permute.xlu1 %2412 }
0x13b7   :  { %v2418_v15 = vsel %vm426_vm1, %v2413_v9, 0  ;;  %v3053_v9 = vld [vmem:[%s4485_s5] ss:$0 sm:$0xff] }
0x13b9   :  { %v3612_v51 = vpop.eup %3611 }
0x13ba   :  { %v2202_v54 = vsel %vm525_vm4, %v3612_v51, 0.0  ;;  %v3614_v47 = vpop.eup %3613  ;;  %v2411_v22 = vpop.permute.xlu1 %2410 }
0x13bb   :  { %2203 = vadd.xlane.f32.xlu0 %v2202_v54  ;;  %v2206_v55 = vmul.f32 %v3614_v47, %v3610_v34 }
0x13bd   :  { %v2209_v58 = vpack.c.bf16 %v2206_v55, %v2206_v55 }
0x13d1   :  { %2211 = vrot.lane.b32.xlu0 %v4051_v62, %s3816_s1 }
0x13d5   :  { %2360 = vrot.lane.b32.xlu0 %v4039_v52, %s3817_s20 }
0x1448   :  { %v2204_v53 = vpop.xlane.xlu0 %2203 }
0x1449   :  { %3615 = vrcp.f32 %v2204_v53 }
0x144c   :  { %v2212_v56 = vpop.permute.xlu0 %2211 }
0x144d   :  { %v2217_v57 = vsel %vm553_vm2, %v2212_v56, 0 }
0x144e   :  { %3396 = vmatpush3.bf16.msra.mxu0 %v2217_v57 }
0x144f   :  { %3407 = vmatprep.subr.bf16.mxu0 %v3810_v1 }
0x1450   :  { %v2361_v2 = vpop.permute.xlu0 %2360 }
0x1451   :  { %3398 = vmatmul.mubr.msk.bf16.vlgmr.msra.gmra.mrb[68].mxu0 %vm525_vm4, %v2209_v58 }
0x1452   :  { %3409 = vmatprep.mubr.msk.bf16.mxu0 %vm3811_vm0, %v3810_v1  ;;  %3408 = vmatpush3.bf16.msra.mxu0 %v3543_v3 }
0x1453   :  { %v3616_v59 = vpop.eup %3615  ;;  %3419 = vmatprep.subr.bf16.mxu0 %v3810_v1 }
0x1454   :  { %v2208_v52 = vmul.f32 %v3616_v59, %v3612_v51  ;;  %v3544_v59 = vld [vmem:[#allocation8 + $0x38] sm:$0xff]  }
0x1456   :  { %v2210_v61 = vpack.c.bf16 %v2208_v52, %v2208_v52 }
0x1458   :  { %3404 = vmatmul.mubr.msk.bf16.vlgmr.msra.gmra.mrb[68].mxu1 %vm525_vm4, %v2210_v61 }
0x1459   :  { %3414 = vmatpush3.bf16.xpose.msra.mxu1 %v2368_v0  ;;  %3415 = vmatprep.mubr.msk.bf16.mxu1 %vm3811_vm0, %v3810_v1 }
0x145a   :  { %3425 = vmatprep.subr.bf16.mxu1 %v3810_v1 }
0x1460   :  { %3416 = vmatmul.mubr.msk.bf16.vlgmr.msra.gmra.mrb[72].mxu1 %vm426_vm1, %v2361_v2 }
0x1461   :  { %3427 = vmatprep.mubr.msk.bf16.mxu1 %vm3811_vm0, %v3810_v1 }
0x1524   :  { %v2253_v5 = vpop.f32.mrb[68].mxu0 }
0x1525   :  { %v3399_v6 = vpop.f32.mrb[69].mxu0 }
0x1526   :  { %v2256_v7 = vpop.f32.mrb[70].mxu0 }
0x1527   :  { %v3400_v8 = vpop.f32.mrb[71].mxu0 }
0x152b   :  { %v2301_v10 = vpop.f32.mrb[68].mxu1 }
0x152c   :  { %v2307_v11 = vpack.c.bf16 %v2301_v10, %v2253_v5  ;;  %v3405_v12 = vpop.f32.mrb[69].mxu1 }
0x152d   :  { %v2304_v13 = vpop.f32.mrb[70].mxu1 }
0x152e   :  { %v3406_v16 = vpop.f32.mrb[71].mxu1  ;;  %3410 = vmatmul.mubr.msk.bf16.vlgmr.msra.gmra.mrb[72].mxu0 %vm426_vm1, %v2307_v11 }
0x152f   :  { %3420 = vmatpush3.bf16.xpose.msra.mxu0 %v2418_v15  ;;  %3421 = vmatprep.mubr.msk.bf16.mxu0 %vm3811_vm0, %v3810_v1 }
0x1530   :  { %3431 = vmatprep.subr.bf16.mxu0 %v3810_v1 }
0x1533   :  { %v2404_v18 = vpop.f32.mrb[72].mxu1 }
0x1534   :  { %v2460_v19 = vmul.f32 0.25, %v2404_v18  ;;  %v3417_v21 = vpop.f32.mrb[73].mxu1 }
0x1535   :  { %v2407_v24 = vpop.f32.mrb[74].mxu1 }
0x1536   :  { %v3418_v25 = vpop.f32.mrb[75].mxu1  ;;  %3422 = vmatmul.mubr.msk.bf16.vlgmr.msra.gmra.mrb[76].mxu0 %vm426_vm1, %v2411_v22  ;;  %v2462_v29 = vsel %vm4061_vm3, -1e+30, %v2460_v19  ;;  %v3545_v22 = vld [vmem:[#allocation10] sm:$0xff]   ;;  %v3546_v24 = vld [vmem:[#allocation10 + $0x8] sm:$0xff]  }
0x1537   :  { %v2464_v30 = vsel %vm525_vm4, %v2462_v29, -inf  ;;  %3433 = vmatprep.mubr.msk.bf16.mxu0 %vm3811_vm0, %v3810_v1 }
0x1538   :  { %2465 = vmax.xlane.f32.xlu0 %v2464_v30 }
0x15c5   :  { %v2466_v32 = vpop.xlane.xlu0 %2465 }
0x15c6   :  { %v2470_v33 = vsub.f32 %v2462_v29, %v2466_v32 }
0x15c8   :  { %v2472_v17 = vmul.f32 1.442695, %v2470_v33 }
0x15ca   :  { %3617 = vpow2.f32 %v2472_v17 }
0x15d4   :  { %v3618_v34 = vpop.eup %3617 }
0x15d5   :  { %v2476_v36 = vsel %vm525_vm4, %v3618_v34, 0.0 }
0x15d6   :  { %2477 = vadd.xlane.f32.xlu0 %v2476_v36  ;;  %v3548_v36 = vld [vmem:[#allocation10 + $0x18] sm:$0xff]  }
0x1601   :  { %v2351_v37 = vpop.f32.mrb[72].mxu0 }
0x1602   :  { %v2358_v23 = vadd.f32 %v2351_v37, %v4355_v20  ;;  %v3411_v38 = vpop.f32.mrb[73].mxu0  ;;  %v3549_v37 = vld [vmem:[#allocation10 + $0x20] sm:$0xff]  }
0x1603   :  { %v2354_v40 = vpop.f32.mrb[74].mxu0  ;;  %v3551_v38 = vld [vmem:[#allocation10 + $0x30] sm:$0xff]  }
0x1604   :  { %v2359_v41 = vadd.f32 %v2354_v40, %v4358_v39  ;;  %v3412_v26 = vpop.f32.mrb[75].mxu0  ;;  %v3552_v40 = vld [vmem:[#allocation10 + $0x38] sm:$0xff]  }
0x1605   :  { %v3554_v26 = vld [vmem:[#allocation11 + $0x8] sm:$0xff]  }
0x1609   :  { %v2454_v31 = vpop.f32.mrb[76].mxu0 }
0x160a   :  { %v2461_v42 = vmul.f32 0.25, %v2454_v31  ;;  %v3423_v43 = vpop.f32.mrb[77].mxu0  ;;  %v3555_v31 = vld [vmem:[#allocation11 + $0x10] sm:$0xff]  }
0x160b   :  { %v2457_v44 = vpop.f32.mrb[78].mxu0  ;;  %v3557_v43 = vld [vmem:[#allocation11 + $0x20] sm:$0xff]  }
0x160c   :  { %v3424_v46 = vpop.f32.mrb[79].mxu0  ;;  %v2463_v14 = vsel %vm4061_vm3, -1e+30, %v2461_v42  ;;  %v3556_v42 = vld [vmem:[#allocation11 + $0x18] sm:$0xff]   ;;  %v3558_v44 = vld [vmem:[#allocation11 + $0x28] sm:$0xff]  }
0x160d   :  { %v2467_v35 = vsel %vm525_vm4, %v2463_v14, -inf }
0x160e   :  { %2468 = vmax.xlane.f32.xlu1 %v2467_v35 }
0x161f   :  { %2536 = vrot.lane.b32.xlu1 %v4053_v63, %s3817_s20 }
0x1663   :  { %v2478_v54 = vpop.xlane.xlu0 %2477 }
0x169b   :  { %v2469_v20 = vpop.xlane.xlu1 %2468 }
0x169c   :  { %v2471_v48 = vsub.f32 %v2463_v14, %v2469_v20 }
0x169e   :  { %v2474_v49 = vmul.f32 1.442695, %v2471_v48 }
0x169f   :  { %v2537_v50 = vpop.permute.xlu1 %2536 }
0x16a0   :  { %3619 = vpow2.f32 %v2474_v49  ;;  %v2542_v39 = vsel %vm553_vm2, %v2537_v50, 0 }
0x16a1   :  { %3432 = vmatpush3.bf16.msra.mxu0 %v2542_v39  ;;  %3621 = vrcp.f32 %v2478_v54  ;;  %v3054_v39 = vld [vmem:[%s4486_s6] ss:$0 sm:$0xff] }
0x16a2   :  { %3443 = vmatprep.subr.bf16.mxu0 %v3810_v1 }
0x16aa   :  { %v3620_v51 = vpop.eup %3619 }
0x16ab   :  { %v2479_v4 = vsel %vm525_vm4, %v3620_v51, 0.0  ;;  %v3622_v63 = vpop.eup %3621 }
0x16ac   :  { %2480 = vadd.xlane.f32.xlu0 %v2479_v4  ;;  %v2483_v47 = vmul.f32 %v3622_v63, %v3618_v34 }
0x16ae   :  { %v2486_v56 = vpack.c.bf16 %v2483_v47, %v2483_v47 }
0x16c2   :  { %2488 = vrot.lane.b32.xlu0 %v4051_v62, %s3817_s20 }
0x1739   :  { %v2481_v45 = vpop.xlane.xlu0 %2480 }
0x173a   :  { %3623 = vrcp.f32 %v2481_v45  ;;  %v3055_v45 = vld [vmem:[%s4487_s7] ss:$0 sm:$0xff] }
0x173d   :  { %v2489_v53 = vpop.permute.xlu0 %2488 }
0x173e   :  { %v2494_v55 = vsel %vm553_vm2, %v2489_v53, 0 }
0x173f   :  { %3426 = vmatpush3.bf16.msra.mxu1 %v2494_v55 }
0x1740   :  { %3437 = vmatprep.subr.bf16.mxu1 %v3810_v1 }
0x1742   :  { %3428 = vmatmul.mubr.msk.bf16.vlgmr.msra.gmra.mrb[76].mxu1 %vm525_vm4, %v2486_v56 }
0x1743   :  { %3439 = vmatprep.mubr.msk.bf16.mxu1 %vm3811_vm0, %v3810_v1  ;;  %3438 = vmatpush3.bf16.msra.mxu1 %v3544_v59 }
0x1744   :  { %v3624_v57 = vpop.eup %3623  ;;  %3463 = vmatprep.subr.bf16.mxu1 %v3810_v1 }
0x1745   :  { %v2485_v62 = vmul.f32 %v3624_v57, %v3620_v51  ;;  %v3559_v57 = vld [vmem:[#allocation11 + $0x30] sm:$0xff]  }
0x1747   :  { %v2487_v58 = vpack.c.bf16 %v2485_v62, %v2485_v62  ;;  %v3560_v62 = vld [vmem:[#allocation11 + $0x38] sm:$0xff]  }
0x1749   :  { %3434 = vmatmul.mubr.msk.bf16.vlgmr.msra.gmra.mrb[80].mxu0 %vm525_vm4, %v2487_v58  ;;  %v3056_v58 = vld [vmem:[%s4489_s9] ss:$0 sm:$0xff] }
0x174a   :  { %3459 = vmatprep.mubr.msk.bf16.mxu0 %vm3811_vm0, %v3810_v1  ;;  %3444 = vmatpush3.bf16.msra.mxu0 %v3545_v22 }
0x174b   :  { %3445 = vmatprep.subr.bf16.mxu0 %v3810_v1 }
0x174e   :  { %3446 = vmatpush3.bf16.msra.mxu0 %v3546_v24 }
0x174f   :  { %3447 = vmatprep.subr.bf16.mxu0 %v3810_v1 }
0x1815   :  { %v2530_v52 = vpop.f32.mrb[76].mxu1 }
0x1816   :  { %v3429_v60 = vpop.f32.mrb[77].mxu1 }
0x1817   :  { %v2533_v61 = vpop.f32.mrb[78].mxu1 }
0x1818   :  { %v3430_v0 = vpop.f32.mrb[79].mxu1 }
0x181c   :  { %v2578_v2 = vpop.f32.mrb[80].mxu0 }
0x181d   :  { %v2584_v3 = vpack.c.bf16 %v2578_v2, %v2530_v52  ;;  %v3435_v5 = vpop.f32.mrb[81].mxu0 }
0x181e   :  { %v2581_v6 = vpop.f32.mrb[82].mxu0 }
0x181f   :  { %v3436_v7 = vpop.f32.mrb[83].mxu0  ;;  %3440 = vmatmul.mubr.msk.bf16.vlgmr.msra.gmra.mrb[80].mxu1 %vm426_vm1, %v2584_v3 }
0x1820   :  { %3479 = vmatprep.mubr.msk.bf16.mxu1 %vm3811_vm0, %v3810_v1 }
0x18f2   :  { %v2628_v8 = vpop.f32.mrb[80].mxu1 }
0x18f3   :  { %v2635_v10 = vadd.f32 %v2628_v8, %v2358_v23  ;;  %v3441_v11 = vpop.f32.mrb[81].mxu1  ;;  %v3550_v23 = vld [vmem:[#allocation10 + $0x28] sm:$0xff]  }
0x18f4   :  { %v2631_v12 = vpop.f32.mrb[82].mxu1 }
0x18f5   :  { %v2644_v13 = vadd.f32 %v3053_v9, %v2635_v10  ;;  %v2636_v15 = vadd.f32 %v2631_v12, %v2359_v41  ;;  %v3442_v16 = vpop.f32.mrb[83].mxu1  ;;  %v3553_v41 = vld [vmem:[#allocation11] sm:$0xff]  }
0x18f6   :  { %3464 = vmatpush3.bf16.msra.mxu1 %v3553_v41 }
0x18f7   :  { %v2645_v18 = vadd.f32 %v3053_v9, %v2636_v15  ;;  %v2646_v19 = vadd.f32 %v2644_v13, %v4006_v27  ;;  %3465 = vmatprep.subr.bf16.mxu1 %v3810_v1 }
0x18f9   :  { %2650 = vadd.xlane.f32.xlu1 %v2646_v19  ;;  %v2647_v21 = vadd.f32 %v2645_v18, %v4008_v28  ;;  %v3547_v28 = vld [vmem:[#allocation10 + $0x10] sm:$0xff]  }
0x18fa   :  { %3448 = vmatpush3.bf16.msra.mxu0 %v3547_v28  ;;  %3466 = vmatpush3.bf16.msra.mxu1 %v3554_v26 }
0x18fb   :  { %2652 = vadd.xlane.f32.xlu0 %v2647_v21  ;;  %3449 = vmatprep.subr.bf16.mxu0 %v3810_v1 }
0x18fc   :  { %3467 = vmatprep.subr.bf16.mxu1 %v3810_v1 }
0x18fe   :  { %3450 = vmatpush3.bf16.msra.mxu0 %v3548_v36  ;;  %3468 = vmatpush3.bf16.msra.mxu1 %v3555_v31  ;;  %v3074_v36 = vld [vmem:[%s4492_s12] ss:$0 sm:$0xff] }
0x18ff   :  { %3451 = vmatprep.subr.bf16.mxu0 %v3810_v1  ;;  %3469 = vmatprep.subr.bf16.mxu1 %v3810_v1 }
0x1902   :  { %3452 = vmatpush3.bf16.msra.mxu0 %v3549_v37  ;;  %3470 = vmatpush3.bf16.msra.mxu1 %v3556_v42 }
0x1903   :  { %3453 = vmatprep.subr.bf16.mxu0 %v3810_v1  ;;  %3471 = vmatprep.subr.bf16.mxu1 %v3810_v1 }
0x1906   :  { %3454 = vmatpush3.bf16.msra.mxu0 %v3550_v23  ;;  %3472 = vmatpush3.bf16.msra.mxu1 %v3557_v43 }
0x1907   :  { %3455 = vmatprep.subr.bf16.mxu0 %v3810_v1  ;;  %3473 = vmatprep.subr.bf16.mxu1 %v3810_v1 }
0x190a   :  { %3456 = vmatpush3.bf16.msra.mxu0 %v3551_v38  ;;  %3474 = vmatpush3.bf16.msra.mxu1 %v3558_v44  ;;  %v3075_v38 = vld [vmem:[%s4493_s13] ss:$0 sm:$0xff] }
0x190b   :  { %3457 = vmatprep.subr.bf16.mxu0 %v3810_v1  ;;  %3475 = vmatprep.subr.bf16.mxu1 %v3810_v1 }
0x190e   :  { %3458 = vmatpush3.bf16.msra.mxu0 %v3552_v40  ;;  %3476 = vmatpush3.bf16.msra.mxu1 %v3559_v57 }
0x190f   :  { %3477 = vmatprep.subr.bf16.mxu1 %v3810_v1  ;;  %v3065_v1 = vld [vmem:[%s4491_s11] ss:$0 sm:$0xff] }
0x1912   :  { %3478 = vmatpush3.bf16.msra.mxu1 %v3560_v62 }
0x1986   :  { %v2651_v25 = vpop.xlane.xlu1 %2650 }
0x1987   :  { %v2655_v29 = vmul.f32 0.0078125, %v2651_v25 }
0x1988   :  { %v2653_v30 = vpop.xlane.xlu0 %2652 }
0x1989   :  { %v2657_v32 = vsub.f32 %v2646_v19, %v2655_v29  ;;  %v2656_v33 = vmul.f32 0.0078125, %v2653_v30 }
0x198b   :  { %v2658_v17 = vsub.f32 %v2647_v21, %v2656_v33  ;;  %v2659_v34 = vmul.f32 %v2657_v32, %v2657_v32 }
0x198d   :  { %2661 = vadd.xlane.f32.xlu0 %v2659_v34  ;;  %v2660_v27 = vmul.f32 %v2658_v17, %v2658_v17 }
0x198f   :  { %2663 = vadd.xlane.f32.xlu1 %v2660_v27 }
0x1a1a   :  { %v2662_v46 = vpop.xlane.xlu0 %2661 }
0x1a1b   :  { %v2665_v14 = vmul.f32 0.0078125, %v2662_v46 }
0x1a1c   :  { %v2664_v35 = vpop.xlane.xlu1 %2663 }
0x1a1d   :  { %v2667_v20 = vadd.f32 1e-05, %v2665_v14  ;;  %v2666_v48 = vmul.f32 0.0078125, %v2664_v35 }
0x1a1f   :  { %3625 = vrsqrt.f32 %v2667_v20  ;;  %v2668_v49 = vadd.f32 1e-05, %v2666_v48 }
0x1a21   :  { %3627 = vrsqrt.f32 %v2668_v49 }
0x1a29   :  { %v3626_v50 = vpop.eup %3625 }
0x1a2a   :  { %v2671_v51 = vmul.f32 %v3626_v50, %v2657_v32 }
0x1a2b   :  { %v3628_v4 = vpop.eup %3627 }
0x1a2c   :  { %v2672_v54 = vmul.f32 %v3628_v4, %v2658_v17  ;;  %v2679_v63 = vmul.f32 %v3054_v39, %v2671_v51 }
0x1a2e   :  { %v2680_v47 = vmul.f32 %v3054_v39, %v2672_v54  ;;  %v2687_v53 = vadd.f32 %v3055_v45, %v2679_v63 }
0x1a30   :  { %v2688_v55 = vadd.f32 %v3055_v45, %v2680_v47 }
0x1a32   :  { %v2689_v56 = vpack.c.bf16 %v2688_v55, %v2687_v53 }
0x1a34   :  { %3460 = vmatmul.mubr.bf16.vlgmr.msra.gmra.mrb[84].mxu0 %v2689_v56 }
0x1b07   :  { %v2795_v59 = vpop.f32.mrb[84].mxu0 }
0x1b08   :  { %v2796_v52 = vadd.f32 %v3056_v58, %v2795_v59  ;;  %v3461_v60 = vpop.f32.mrb[85].mxu0 }
0x1b09   :  { %v2798_v61 = vpop.f32.mrb[86].mxu0 }
0x1b0a   :  { %v2799_v0 = vadd.f32 %v3056_v58, %v2798_v61  ;;  %v3462_v2 = vpop.f32.mrb[87].mxu0  ;;  %v2802_v3 = vmax.f32 %v2796_v52, 0.0 }
0x1b0c   :  { %v2803_v5 = vmax.f32 %v2799_v0, 0.0 }
0x1b0e   :  { %v2804_v6 = vpack.c.bf16 %v2803_v5, %v2802_v3 }
0x1b10   :  { %3480 = vmatmul.mubr.bf16.vlgmr.msra.gmra.mrb[84].mxu1 %v2804_v6 }
0x1be3   :  { %v2910_v7 = vpop.f32.mrb[84].mxu1 }
0x1be4   :  { %v2911_v8 = vadd.f32 %v3065_v1, %v2910_v7  ;;  %v3481_v9 = vpop.f32.mrb[85].mxu1 }
0x1be5   :  { %v2913_v10 = vpop.f32.mrb[86].mxu1 }
0x1be6   :  { %v2914_v11 = vadd.f32 %v3065_v1, %v2913_v10  ;;  %v3482_v12 = vpop.f32.mrb[87].mxu1  ;;  %v2917_v13 = vadd.f32 %v2911_v8, %v2687_v53 }
0x1be8   :  { %2921 = vadd.xlane.f32.xlu0 %v2917_v13  ;;  %v2918_v15 = vadd.f32 %v2914_v11, %v2688_v55 }
0x1bea   :  { %2923 = vadd.xlane.f32.xlu1 %v2918_v15 }
0x1c75   :  { %v2922_v16 = vpop.xlane.xlu0 %2921 }
0x1c76   :  { %v2925_v18 = vmul.f32 0.0078125, %v2922_v16 }
0x1c77   :  { %v2924_v19 = vpop.xlane.xlu1 %2923 }
0x1c78   :  { %v2927_v21 = vsub.f32 %v2917_v13, %v2925_v18  ;;  %v2926_v22 = vmul.f32 0.0078125, %v2924_v19 }
0x1c7a   :  { %v2928_v24 = vsub.f32 %v2918_v15, %v2926_v22  ;;  %v2929_v25 = vmul.f32 %v2927_v21, %v2927_v21 }
0x1c7c   :  { %2931 = vadd.xlane.f32.xlu0 %v2929_v25  ;;  %v2930_v29 = vmul.f32 %v2928_v24, %v2928_v24 }
0x1c7e   :  { %2933 = vadd.xlane.f32.xlu1 %v2930_v29 }
0x1d09   :  { %v2932_v30 = vpop.xlane.xlu0 %2931 }
0x1d0a   :  { %v2935_v32 = vmul.f32 0.0078125, %v2932_v30 }
0x1d0b   :  { %v2934_v33 = vpop.xlane.xlu1 %2933 }
0x1d0c   :  { %v2937_v17 = vadd.f32 1e-05, %v2935_v32  ;;  %v2936_v34 = vmul.f32 0.0078125, %v2934_v33 }
0x1d0e   :  { %3629 = vrsqrt.f32 %v2937_v17  ;;  %v2938_v27 = vadd.f32 1e-05, %v2936_v34 }
0x1d10   :  { %3631 = vrsqrt.f32 %v2938_v27 }
0x1d18   :  { %v3630_v28 = vpop.eup %3629 }
0x1d19   :  { %v2941_v37 = vmul.f32 %v3630_v28, %v2927_v21 }
0x1d1a   :  { %v3632_v23 = vpop.eup %3631 }
0x1d1b   :  { %v2942_v40 = vmul.f32 %v3632_v23, %v2928_v24  ;;  %v2949_v41 = vmul.f32 %v3074_v36, %v2941_v37 }
0x1d1d   :  { %v2950_v26 = vmul.f32 %v3074_v36, %v2942_v40  ;;  %v2957_v31 = vadd.f32 %v3075_v38, %v2949_v41 }
0x1d1f   :  { %v2958_v42 = vadd.f32 %v3075_v38, %v2950_v26  ;;  %2959 = vst [vmem:[#allocation13] sm:$0xff] %v2957_v31 }
0x1d21   :  { %2960 = vst [vmem:[#allocation13 + $0x8] sm:$0xff] %v2958_v42 }
0x1d22   :  { %3776 = shalt.err (!%p3773_p10)
}
0x1d23   :  { %s3777_s13 = scalar_lea.hbm %s4494_s14, 256 }
0x1d24   :  { %p3778_p11 = scmp.ne.s32.totalorder %s4494_s14, %s3777_s13  ;;  %p3781_p12 = scmp.lt.u32.totalorder %s3777_s13, %s4494_s14 }
0x1d26   :  { %p3783_p13 = pnand %p3781_p12, %p3778_p11 }
0x1d28   :  { %3786 = shalt.err (!%p3783_p13)
}
0x1d29   :  { %s4501_s29 = smov 8  }
0x1d2a   :  { %2972 = dma.vmem_to_hbm [thread:$0]  %s2967_s25, 256, %s4494_s14, [#allocation4], %s4498_s16, %s4498_s16, %s4501_s29  }
0x1d2b   :  { %3795 = dma.done.wait [#allocation4], 256  }
0x1d2c   :  { %3796 = vsyncadd [#allocation4], 4294967040 }
0x1d2d   :  { %2976 = vsyncpa [#allocation3], 1 }
0x1d2e   :  { %2977 = vsyncpa [#allocation6], 1 }
0x1d2f   :  { %2978 = vsyncpa [#allocation9], 1 }
0x1d30   :  { %2979 = vsyncpa [#allocation12], 1 }
0x1d31   :  { %2980 = vsyncpa [#allocation4], 1 }

</bundles_post_ra>
